<compile_context>
chip_gen: v5e
topology: v5e:2x2
jax: 0.10.0
libtpu: 0.0.40
codegen_flags: <defaults>
</compile_context>

<pallas_src>
import numpy as np
import jax
import jax.numpy as jnp
from jax.experimental import pallas as pl
from jax.experimental.pallas import tpu as pltpu

C_IN, C_OUT, K = 2, 2, 2
STRIDE, PAD, OUT_PAD = 2, 1, 1


def _convt_kernel(x_ref, w_ref, b_ref, o_ref):
    """One batch element per grid step.

    x_ref: (1, C_IN, H, W)            VMEM
    w_ref: (C_IN*C_OUT*K*K,) flat     SMEM (scalar weights)
    b_ref: (C_OUT,)                   SMEM (scalar bias)
    o_ref: (1, C_OUT, H_OUT, W_OUT)   VMEM  -- final, already-cropped output
    """
    _, _, h, w = x_ref.shape
    _, _, h_out, w_out = o_ref.shape
    f32 = jnp.float32

    # Hoisted input-channel loads: reused by all 4 taps x 2 output channels.
    x0 = x_ref[0, 0, :, :].astype(f32)
    x1 = x_ref[0, 1, :, :].astype(f32)

    # 0/1 scatter matrices: tap (kh, kw) contributes to output position
    # (STRIDE*ih + kh - PAD, STRIDE*iw + kw - PAD); the crop (padding/output_padding)
    # is folded into the same matrices.  Built once per grid step from 2-D iotas.
    oh = jax.lax.broadcasted_iota(jnp.int32, (h_out, h), 0)
    ih = jax.lax.broadcasted_iota(jnp.int32, (h_out, h), 1)
    prow = [(oh == STRIDE * ih + kh - PAD).astype(f32) for kh in range(K)]   # (H_OUT, H)

    iw = jax.lax.broadcasted_iota(jnp.int32, (w, w_out), 0)
    ow = jax.lax.broadcasted_iota(jnp.int32, (w, w_out), 1)
    scol = [(ow == STRIDE * iw + kw - PAD).astype(f32) for kw in range(K)]   # (W, W_OUT)

    def wv(ic, oc, kh, kw):  # scalar weight from SMEM (static index)
        return w_ref[((ic * C_OUT + oc) * K + kh) * K + kw]

    for oc in range(C_OUT):
        acc = None
        for kh in range(K):
            inner = None
            for kw in range(K):
                # Channel contraction on the VPU with SMEM scalars.
                t = x0 * wv(0, oc, kh, kw) + x1 * wv(1, oc, kh, kw)          # (H, W)
                # Column scatter (+ crop) via MXU: each scol column has at most one 1.
                p = jnp.dot(t, scol[kw],
                            precision=jax.lax.Precision.HIGHEST,
                            preferred_element_type=f32)                      # (H, W_OUT)
                inner = p if inner is None else inner + p
            # Row scatter (+ crop) via MXU.
            c = jnp.dot(prow[kh], inner,
                        precision=jax.lax.Precision.HIGHEST,
                        preferred_element_type=f32)                          # (H_OUT, W_OUT)
            acc = c if acc is None else acc + c
        o_ref[0, oc, :, :] = (acc + b_ref[oc]).astype(o_ref.dtype)


def conv_transpose2d(x, weight, bias):
    """x: (N, C_IN, H, W) f32; weight: (C_IN, C_OUT, K, K) f32; bias: (C_OUT,) f32."""
    n, cin, h, w = x.shape
    assert cin == C_IN
    h_out = (h - 1) * STRIDE - 2 * PAD + K + OUT_PAD
    w_out = (w - 1) * STRIDE - 2 * PAD + K + OUT_PAD

    return pl.pallas_call(
        _convt_kernel,
        out_shape=jax.ShapeDtypeStruct((n, C_OUT, h_out, w_out), jnp.float32),
        grid=(n,),
        in_specs=[
            pl.BlockSpec((1, C_IN, h, w), lambda i: (i, 0, 0, 0)),
            pl.BlockSpec(memory_space=pltpu.MemorySpace.SMEM),   # flat weights
            pl.BlockSpec(memory_space=pltpu.MemorySpace.SMEM),   # bias
        ],
        out_specs=pl.BlockSpec((1, C_OUT, h_out, w_out), lambda i: (i, 0, 0, 0)),
        compiler_params=pltpu.CompilerParams(
            dimension_semantics=("parallel",)),
    )(x, weight.reshape(-1), bias)


def _ref_conv_transpose2d(x, weight, bias):
    """Direct-loop NumPy reference with PyTorch ConvTranspose2d semantics."""
    x = np.asarray(x)
    weight = np.asarray(weight)
    bias = np.asarray(bias)
    n, cin, h, w = x.shape
    h_out = (h - 1) * STRIDE - 2 * PAD + K + OUT_PAD
    w_out = (w - 1) * STRIDE - 2 * PAD + K + OUT_PAD
    out = np.zeros((n, C_OUT, h_out, w_out), np.float32)
    for b in range(n):
        for ic in range(cin):
            for ihh in range(h):
                for iww in range(w):
                    for oc in range(C_OUT):
                        for kh in range(K):
                            for kw in range(K):
                                oh = ihh * STRIDE - PAD + kh
                                ow = iww * STRIDE - PAD + kw
                                if 0 <= oh < h_out and 0 <= ow < w_out:
                                    out[b, oc, oh, ow] += (
                                        x[b, ic, ihh, iww] * weight[ic, oc, kh, kw]
                                    )
    out += bias.reshape(1, C_OUT, 1, 1)
    return out


if __name__ == "__main__":
    key = jax.random.PRNGKey(0)
    kx, kw, kb = jax.random.split(key, 3)

    N, H, W = 2, 16, 16
    x = jax.random.normal(kx, (N, C_IN, H, W), dtype=jnp.float32)

    # Deterministic init matching PyTorch's default U(-1/sqrt(fan_in), 1/sqrt(fan_in)),
    # fan_in = C_IN * K * K.
    bound = 1.0 / np.sqrt(C_IN * K * K)
    weight = jax.random.uniform(
        kw, (C_IN, C_OUT, K, K), dtype=jnp.float32, minval=-bound, maxval=bound
    )
    bias = jax.random.uniform(
        kb, (C_OUT,), dtype=jnp.float32, minval=-bound, maxval=bound
    )

    out = conv_transpose2d(x, weight, bias)
    out = jax.block_until_ready(out)

    ref = _ref_conv_transpose2d(x, weight, bias)
    assert out.shape == ref.shape, (out.shape, ref.shape)
    np.testing.assert_allclose(np.asarray(out), ref, rtol=1e-4, atol=1e-4)

    print("KERNEL_OK")
</pallas_src>

<mosaic_0001>
module attributes {stable_mosaic.version = 11 : i64} {
  func.func @_convt_kernel(%arg0: i32, %arg1: memref<1x2x16x16xf32, #tpu.memory_space<vmem>>, %arg2: memref<16xf32, #tpu.memory_space<smem>>, %arg3: memref<2xf32, #tpu.memory_space<smem>>, %arg4: memref<1x2x31x31xf32, #tpu.memory_space<vmem>>) attributes {dimension_semantics = [#tpu.dimension_semantics<parallel>], iteration_bounds = array<i64: 2>, scalar_prefetch = 0 : i64, scratch_operands = 0 : i64, tpu.core_type = #tpu.core_type<tc>, window_params = [{transform_indices = @transform_0, window_bounds = array<i64: 1, 2, 16, 16>}, {transform_indices = @transform_1, window_bounds = array<i64: 16>}, {transform_indices = @transform_2, window_bounds = array<i64: 2>}, {transform_indices = @transform_3, window_bounds = array<i64: 1, 2, 31, 31>}]} {
    %c0 = arith.constant 0 : index
    %c0_0 = arith.constant 0 : index
    %c0_1 = arith.constant 0 : index
    %c0_2 = arith.constant 0 : index
    %0 = vector.load %arg1[%c0, %c0_0, %c0_1, %c0_2] : memref<1x2x16x16xf32, #tpu.memory_space<vmem>>, vector<1x1x16x16xf32>
    %1 = vector.shape_cast %0 : vector<1x1x16x16xf32> to vector<16x16xf32>
    %c0_3 = arith.constant 0 : index
    %c1 = arith.constant 1 : index
    %c0_4 = arith.constant 0 : index
    %c0_5 = arith.constant 0 : index
    %2 = vector.load %arg1[%c0_3, %c1, %c0_4, %c0_5] : memref<1x2x16x16xf32, #tpu.memory_space<vmem>>, vector<1x1x16x16xf32>
    %3 = vector.shape_cast %2 : vector<1x1x16x16xf32> to vector<16x16xf32>
    %4 = tpu.iota {dimensions = array<i32: 0>} : vector<31x16xi32>
    %5 = tpu.iota {dimensions = array<i32: 1>} : vector<31x16xi32>
    %c2_i32 = arith.constant 2 : i32
    %6 = vector.broadcast %c2_i32 : i32 to vector<31x16xi32>
    %7 = arith.muli %6, %5 : vector<31x16xi32>
    %c0_i32 = arith.constant 0 : i32
    %8 = vector.broadcast %c0_i32 : i32 to vector<31x16xi32>
    %9 = arith.addi %7, %8 : vector<31x16xi32>
    %c1_i32 = arith.constant 1 : i32
    %10 = vector.broadcast %c1_i32 : i32 to vector<31x16xi32>
    %11 = arith.subi %9, %10 : vector<31x16xi32>
    %12 = arith.cmpi eq, %4, %11 : vector<31x16xi32>
    %13 = arith.extui %12 : vector<31x16xi1> to vector<31x16xi32>
    %14 = arith.sitofp %13 : vector<31x16xi32> to vector<31x16xf32>
    %c2_i32_6 = arith.constant 2 : i32
    %15 = vector.broadcast %c2_i32_6 : i32 to vector<31x16xi32>
    %16 = arith.muli %15, %5 : vector<31x16xi32>
    %c1_i32_7 = arith.constant 1 : i32
    %17 = vector.broadcast %c1_i32_7 : i32 to vector<31x16xi32>
    %18 = arith.addi %16, %17 : vector<31x16xi32>
    %c1_i32_8 = arith.constant 1 : i32
    %19 = vector.broadcast %c1_i32_8 : i32 to vector<31x16xi32>
    %20 = arith.subi %18, %19 : vector<31x16xi32>
    %21 = arith.cmpi eq, %4, %20 : vector<31x16xi32>
    %22 = arith.extui %21 : vector<31x16xi1> to vector<31x16xi32>
    %23 = arith.sitofp %22 : vector<31x16xi32> to vector<31x16xf32>
    %24 = tpu.iota {dimensions = array<i32: 0>} : vector<16x31xi32>
    %25 = tpu.iota {dimensions = array<i32: 1>} : vector<16x31xi32>
    %c2_i32_9 = arith.constant 2 : i32
    %26 = vector.broadcast %c2_i32_9 : i32 to vector<16x31xi32>
    %27 = arith.muli %26, %24 : vector<16x31xi32>
    %c0_i32_10 = arith.constant 0 : i32
    %28 = vector.broadcast %c0_i32_10 : i32 to vector<16x31xi32>
    %29 = arith.addi %27, %28 : vector<16x31xi32>
    %c1_i32_11 = arith.constant 1 : i32
    %30 = vector.broadcast %c1_i32_11 : i32 to vector<16x31xi32>
    %31 = arith.subi %29, %30 : vector<16x31xi32>
    %32 = arith.cmpi eq, %25, %31 : vector<16x31xi32>
    %33 = arith.extui %32 : vector<16x31xi1> to vector<16x31xi32>
    %34 = arith.sitofp %33 : vector<16x31xi32> to vector<16x31xf32>
    %c2_i32_12 = arith.constant 2 : i32
    %35 = vector.broadcast %c2_i32_12 : i32 to vector<16x31xi32>
    %36 = arith.muli %35, %24 : vector<16x31xi32>
    %c1_i32_13 = arith.constant 1 : i32
    %37 = vector.broadcast %c1_i32_13 : i32 to vector<16x31xi32>
    %38 = arith.addi %36, %37 : vector<16x31xi32>
    %c1_i32_14 = arith.constant 1 : i32
    %39 = vector.broadcast %c1_i32_14 : i32 to vector<16x31xi32>
    %40 = arith.subi %38, %39 : vector<16x31xi32>
    %41 = arith.cmpi eq, %25, %40 : vector<16x31xi32>
    %42 = arith.extui %41 : vector<16x31xi1> to vector<16x31xi32>
    %43 = arith.sitofp %42 : vector<16x31xi32> to vector<16x31xf32>
    %c0_15 = arith.constant 0 : index
    %44 = memref.load %arg2[%c0_15] : memref<16xf32, #tpu.memory_space<smem>>
    %45 = vector.broadcast %44 : f32 to vector<16x16xf32>
    %46 = arith.mulf %1, %45 : vector<16x16xf32>
    %c8 = arith.constant 8 : index
    %47 = memref.load %arg2[%c8] : memref<16xf32, #tpu.memory_space<smem>>
    %48 = vector.broadcast %47 : f32 to vector<16x16xf32>
    %49 = arith.mulf %3, %48 : vector<16x16xf32>
    %50 = arith.addf %46, %49 : vector<16x16xf32>
    %cst = arith.constant dense<0.000000e+00> : vector<16x31xf32>
    %51 = tpu.matmul %50, %34, %cst {dimension_numbers = #tpu.dot_dimension_numbers<[1], [0], [0], [1], [0, 0, 1, 1], [], []>, precision = #tpu.contract_precision<fp32>} : vector<16x16xf32>, vector<16x31xf32>, vector<16x31xf32> -> vector<16x31xf32>
    %c1_16 = arith.constant 1 : index
    %52 = memref.load %arg2[%c1_16] : memref<16xf32, #tpu.memory_space<smem>>
    %53 = vector.broadcast %52 : f32 to vector<16x16xf32>
    %54 = arith.mulf %1, %53 : vector<16x16xf32>
    %c9 = arith.constant 9 : index
    %55 = memref.load %arg2[%c9] : memref<16xf32, #tpu.memory_space<smem>>
    %56 = vector.broadcast %55 : f32 to vector<16x16xf32>
    %57 = arith.mulf %3, %56 : vector<16x16xf32>
    %58 = arith.addf %54, %57 : vector<16x16xf32>
    %cst_17 = arith.constant dense<0.000000e+00> : vector<16x31xf32>
    %59 = tpu.matmul %58, %43, %cst_17 {dimension_numbers = #tpu.dot_dimension_numbers<[1], [0], [0], [1], [0, 0, 1, 1], [], []>, precision = #tpu.contract_precision<fp32>} : vector<16x16xf32>, vector<16x31xf32>, vector<16x31xf32> -> vector<16x31xf32>
    %60 = arith.addf %51, %59 : vector<16x31xf32>
    %cst_18 = arith.constant dense<0.000000e+00> : vector<31x31xf32>
    %61 = tpu.matmul %14, %60, %cst_18 {dimension_numbers = #tpu.dot_dimension_numbers<[1], [0], [0], [1], [0, 0, 1, 1], [], []>, precision = #tpu.contract_precision<fp32>} : vector<31x16xf32>, vector<16x31xf32>, vector<31x31xf32> -> vector<31x31xf32>
    %c2 = arith.constant 2 : index
    %62 = memref.load %arg2[%c2] : memref<16xf32, #tpu.memory_space<smem>>
    %63 = vector.broadcast %62 : f32 to vector<16x16xf32>
    %64 = arith.mulf %1, %63 : vector<16x16xf32>
    %c10 = arith.constant 10 : index
    %65 = memref.load %arg2[%c10] : memref<16xf32, #tpu.memory_space<smem>>
    %66 = vector.broadcast %65 : f32 to vector<16x16xf32>
    %67 = arith.mulf %3, %66 : vector<16x16xf32>
    %68 = arith.addf %64, %67 : vector<16x16xf32>
    %cst_19 = arith.constant dense<0.000000e+00> : vector<16x31xf32>
    %69 = tpu.matmul %68, %34, %cst_19 {dimension_numbers = #tpu.dot_dimension_numbers<[1], [0], [0], [1], [0, 0, 1, 1], [], []>, precision = #tpu.contract_precision<fp32>} : vector<16x16xf32>, vector<16x31xf32>, vector<16x31xf32> -> vector<16x31xf32>
    %c3 = arith.constant 3 : index
    %70 = memref.load %arg2[%c3] : memref<16xf32, #tpu.memory_space<smem>>
    %71 = vector.broadcast %70 : f32 to vector<16x16xf32>
    %72 = arith.mulf %1, %71 : vector<16x16xf32>
    %c11 = arith.constant 11 : index
    %73 = memref.load %arg2[%c11] : memref<16xf32, #tpu.memory_space<smem>>
    %74 = vector.broadcast %73 : f32 to vector<16x16xf32>
    %75 = arith.mulf %3, %74 : vector<16x16xf32>
    %76 = arith.addf %72, %75 : vector<16x16xf32>
    %cst_20 = arith.constant dense<0.000000e+00> : vector<16x31xf32>
    %77 = tpu.matmul %76, %43, %cst_20 {dimension_numbers = #tpu.dot_dimension_numbers<[1], [0], [0], [1], [0, 0, 1, 1], [], []>, precision = #tpu.contract_precision<fp32>} : vector<16x16xf32>, vector<16x31xf32>, vector<16x31xf32> -> vector<16x31xf32>
    %78 = arith.addf %69, %77 : vector<16x31xf32>
    %cst_21 = arith.constant dense<0.000000e+00> : vector<31x31xf32>
    %79 = tpu.matmul %23, %78, %cst_21 {dimension_numbers = #tpu.dot_dimension_numbers<[1], [0], [0], [1], [0, 0, 1, 1], [], []>, precision = #tpu.contract_precision<fp32>} : vector<31x16xf32>, vector<16x31xf32>, vector<31x31xf32> -> vector<31x31xf32>
    %80 = arith.addf %61, %79 : vector<31x31xf32>
    %c0_22 = arith.constant 0 : index
    %81 = memref.load %arg3[%c0_22] : memref<2xf32, #tpu.memory_space<smem>>
    %82 = vector.broadcast %81 : f32 to vector<31x31xf32>
    %83 = arith.addf %80, %82 : vector<31x31xf32>
    %c0_23 = arith.constant 0 : index
    %c0_24 = arith.constant 0 : index
    %c0_25 = arith.constant 0 : index
    %c0_26 = arith.constant 0 : index
    %84 = vector.load %arg4[%c0_23, %c0_24, %c0_25, %c0_26] : memref<1x2x31x31xf32, #tpu.memory_space<vmem>>, vector<1x1x31x31xf32>
    %85 = vector.shape_cast %84 : vector<1x1x31x31xf32> to vector<31x31xf32>
    %86 = vector.shape_cast %83 : vector<31x31xf32> to vector<1x1x31x31xf32>
    tpu.vector_store %arg4[%c0_23, %c0_24, %c0_25, %c0_26], %86 {strides = array<i32>} : memref<1x2x31x31xf32, #tpu.memory_space<vmem>>, vector<1x1x31x31xf32>,
    %c4 = arith.constant 4 : index
    %87 = memref.load %arg2[%c4] : memref<16xf32, #tpu.memory_space<smem>>
    %88 = vector.broadcast %87 : f32 to vector<16x16xf32>
    %89 = arith.mulf %1, %88 : vector<16x16xf32>
    %c12 = arith.constant 12 : index
    %90 = memref.load %arg2[%c12] : memref<16xf32, #tpu.memory_space<smem>>
    %91 = vector.broadcast %90 : f32 to vector<16x16xf32>
    %92 = arith.mulf %3, %91 : vector<16x16xf32>
    %93 = arith.addf %89, %92 : vector<16x16xf32>
    %cst_27 = arith.constant dense<0.000000e+00> : vector<16x31xf32>
    %94 = tpu.matmul %93, %34, %cst_27 {dimension_numbers = #tpu.dot_dimension_numbers<[1], [0], [0], [1], [0, 0, 1, 1], [], []>, precision = #tpu.contract_precision<fp32>} : vector<16x16xf32>, vector<16x31xf32>, vector<16x31xf32> -> vector<16x31xf32>
    %c5 = arith.constant 5 : index
    %95 = memref.load %arg2[%c5] : memref<16xf32, #tpu.memory_space<smem>>
    %96 = vector.broadcast %95 : f32 to vector<16x16xf32>
    %97 = arith.mulf %1, %96 : vector<16x16xf32>
    %c13 = arith.constant 13 : index
    %98 = memref.load %arg2[%c13] : memref<16xf32, #tpu.memory_space<smem>>
    %99 = vector.broadcast %98 : f32 to vector<16x16xf32>
    %100 = arith.mulf %3, %99 : vector<16x16xf32>
    %101 = arith.addf %97, %100 : vector<16x16xf32>
    %cst_28 = arith.constant dense<0.000000e+00> : vector<16x31xf32>
    %102 = tpu.matmul %101, %43, %cst_28 {dimension_numbers = #tpu.dot_dimension_numbers<[1], [0], [0], [1], [0, 0, 1, 1], [], []>, precision = #tpu.contract_precision<fp32>} : vector<16x16xf32>, vector<16x31xf32>, vector<16x31xf32> -> vector<16x31xf32>
    %103 = arith.addf %94, %102 : vector<16x31xf32>
    %cst_29 = arith.constant dense<0.000000e+00> : vector<31x31xf32>
    %104 = tpu.matmul %14, %103, %cst_29 {dimension_numbers = #tpu.dot_dimension_numbers<[1], [0], [0], [1], [0, 0, 1, 1], [], []>, precision = #tpu.contract_precision<fp32>} : vector<31x16xf32>, vector<16x31xf32>, vector<31x31xf32> -> vector<31x31xf32>
    %c6 = arith.constant 6 : index
    %105 = memref.load %arg2[%c6] : memref<16xf32, #tpu.memory_space<smem>>
    %106 = vector.broadcast %105 : f32 to vector<16x16xf32>
    %107 = arith.mulf %1, %106 : vector<16x16xf32>
    %c14 = arith.constant 14 : index
    %108 = memref.load %arg2[%c14] : memref<16xf32, #tpu.memory_space<smem>>
    %109 = vector.broadcast %108 : f32 to vector<16x16xf32>
    %110 = arith.mulf %3, %109 : vector<16x16xf32>
    %111 = arith.addf %107, %110 : vector<16x16xf32>
    %cst_30 = arith.constant dense<0.000000e+00> : vector<16x31xf32>
    %112 = tpu.matmul %111, %34, %cst_30 {dimension_numbers = #tpu.dot_dimension_numbers<[1], [0], [0], [1], [0, 0, 1, 1], [], []>, precision = #tpu.contract_precision<fp32>} : vector<16x16xf32>, vector<16x31xf32>, vector<16x31xf32> -> vector<16x31xf32>
    %c7 = arith.constant 7 : index
    %113 = memref.load %arg2[%c7] : memref<16xf32, #tpu.memory_space<smem>>
    %114 = vector.broadcast %113 : f32 to vector<16x16xf32>
    %115 = arith.mulf %1, %114 : vector<16x16xf32>
    %c15 = arith.constant 15 : index
    %116 = memref.load %arg2[%c15] : memref<16xf32, #tpu.memory_space<smem>>
    %117 = vector.broadcast %116 : f32 to vector<16x16xf32>
    %118 = arith.mulf %3, %117 : vector<16x16xf32>
    %119 = arith.addf %115, %118 : vector<16x16xf32>
    %cst_31 = arith.constant dense<0.000000e+00> : vector<16x31xf32>
    %120 = tpu.matmul %119, %43, %cst_31 {dimension_numbers = #tpu.dot_dimension_numbers<[1], [0], [0], [1], [0, 0, 1, 1], [], []>, precision = #tpu.contract_precision<fp32>} : vector<16x16xf32>, vector<16x31xf32>, vector<16x31xf32> -> vector<16x31xf32>
    %121 = arith.addf %112, %120 : vector<16x31xf32>
    %cst_32 = arith.constant dense<0.000000e+00> : vector<31x31xf32>
    %122 = tpu.matmul %23, %121, %cst_32 {dimension_numbers = #tpu.dot_dimension_numbers<[1], [0], [0], [1], [0, 0, 1, 1], [], []>, precision = #tpu.contract_precision<fp32>} : vector<31x16xf32>, vector<16x31xf32>, vector<31x31xf32> -> vector<31x31xf32>
    %123 = arith.addf %104, %122 : vector<31x31xf32>
    %c1_33 = arith.constant 1 : index
    %124 = memref.load %arg3[%c1_33] : memref<2xf32, #tpu.memory_space<smem>>
    %125 = vector.broadcast %124 : f32 to vector<31x31xf32>
    %126 = arith.addf %123, %125 : vector<31x31xf32>
    %c0_34 = arith.constant 0 : index
    %c1_35 = arith.constant 1 : index
    %c0_36 = arith.constant 0 : index
    %c0_37 = arith.constant 0 : index
    %127 = vector.load %arg4[%c0_34, %c1_35, %c0_36, %c0_37] : memref<1x2x31x31xf32, #tpu.memory_space<vmem>>, vector<1x1x31x31xf32>
    %128 = vector.shape_cast %127 : vector<1x1x31x31xf32> to vector<31x31xf32>
    %129 = vector.shape_cast %126 : vector<31x31xf32> to vector<1x1x31x31xf32>
    tpu.vector_store %arg4[%c0_34, %c1_35, %c0_36, %c0_37], %129 {strides = array<i32>} : memref<1x2x31x31xf32, #tpu.memory_space<vmem>>, vector<1x1x31x31xf32>,
    return
  }
  func.func @transform_0(%arg0: i32) -> (i32, i32, i32, i32) {
    %c0_i32 = arith.constant 0 : i32
    %c0_i32_0 = arith.constant 0 : i32
    %c0_i32_1 = arith.constant 0 : i32
    %c0_i32_2 = arith.constant 0 : i32
    return %arg0, %c0_i32, %c0_i32_0, %c0_i32_1 : i32, i32, i32, i32
  }
  func.func @transform_1(%arg0: i32) -> i32 {
    %c0_i32 = arith.constant 0 : i32
    %c0_i32_0 = arith.constant 0 : i32
    return %c0_i32 : i32
  }
  func.func @transform_2(%arg0: i32) -> i32 {
    %c0_i32 = arith.constant 0 : i32
    %c0_i32_0 = arith.constant 0 : i32
    return %c0_i32 : i32
  }
  func.func @transform_3(%arg0: i32) -> (i32, i32, i32, i32) {
    %c0_i32 = arith.constant 0 : i32
    %c0_i32_0 = arith.constant 0 : i32
    %c0_i32_1 = arith.constant 0 : i32
    %c0_i32_2 = arith.constant 0 : i32
    return %arg0, %c0_i32, %c0_i32_0, %c0_i32_1 : i32, i32, i32, i32
  }
}

</mosaic_0001>

<bundles_post_ra>
// kernel: tpu_custom_call.1
= control target key start
LH: loop header
LB: loop body
LE: loop exit
PB: predicated region body
PF: predicated region fallthrough
CT: control target
= control target key end

     0   :  { %8 = vsyncpa [#allocation3], 0  ;;  %s4341_s0 = inlined_call_operand.hbm [shape: f32[2,2,16,16], index: 0, kind: input, shape index: {}]   ;;  %s4342_s1 = inlined_call_operand.hbm [shape: f32[16], index: 1, kind: input, shape index: {}]   ;;  %s4343_s2 = inlined_call_operand.vmem [shape: f32[2], index: 2, kind: input, shape index: {}]   ;;  %s4344_s3 = inlined_call_operand.vmem [shape: f32[2,2,31,31], index: 3, kind: output, shape index: {}]  }
   0x1   :  { %10 = vsyncpa [#allocation3 + $0x1], 0 }
   0x2   :  { %11 = vsyncpa [#allocation4], 0 }
   0x3   :  { %12 = vsyncpa [#allocation5], 0  ;;  %s3418_s12 = smov 0   ;;  %s3420_s13 = smov 0  }
   0x4   :  { %s3422_s14 = smov 0   ;;  %s3424_s15 = smov 0  }
   0x5 LB: > { %s3437_s16 = sadd.s32 4294967295, %s3390_s15   ;;  %s3440_s17 = sadd.s32 1, %s3390_s15   ;;  %s3390_s15 = sphi %s3424_s15, %s4435_s15   ;;  %s3386_s14 = sphi %s3422_s14, %s4434_s14   ;;  %s3382_s13 = sphi %s3420_s13, %s4433_s13   ;;  %s3378_s12 = sphi %s3418_s12, %s4432_s12  }
   0x6   : > { %s22_s18 = ssub.s32 %s3390_s15, %s3440_s17  ;;  %s25_s19 = sadd.s32 1, %s3386_s14 }
   0x7   : > { %p23_p0 = scmp.eq.s32.totalorder %s22_s18, 0  ;;  %p32_p1 = scmp.ne.s32.totalorder %s3386_s14, %s3382_s13 }
   0x8   : > { %p33_p2 = scmp.eq.s32.totalorder %s3390_s15, 0  ;;  %p38_p3 = scmp.ne.s32.totalorder %s3382_s13, %s3378_s12 }
   0x9   : > { %s3450_s20 = scalar_select %p23_p0, %s3386_s14, %s25_s19  }
   0xa   : > { %p3452_p4 = por %p33_p2, %p32_p1  ;;  %p39_p5 = scmp.eq.s32.totalorder %s3437_s16, 0 }
   0xb   : > { %p3070_p6 = scmp.ge.s32.totalorder %s3390_s15, 1  ;;  %p117_p7 = scmp.lt.s32.totalorder %s3390_s15, 3 }
   0xc   : > { %p3461_p8 = por %p39_p5, %p38_p3  ;;  %s129_s26 = sshll.u32 %s4342_s1, 4  ;;  %s130_s26 = int_to_ptr.hbm [resolvable:$true] %s129_s26 }
   0xd   : > { %p3465_p9 = pnand %p3070_p6, %p117_p7  ;;  %p3243_p11 = scmp.lt.s32.totalorder %s3390_s15, 2 }
   0xe   : > { %s139_s29 = sshll.u32 %s4343_s2, 4  ;;  %s150_s4 = sand.u32 1, %s3386_s14   ;;  %s140_s29 = int_to_ptr.vmem [resolvable:$true] %s139_s29 }
   0xf   : > { %p3230_p10 = pneg %p3465_p9  ;;  %p3482_p13 = pnand %p3243_p11, %p3452_p4 }
  0x10   : > { %s3392_s5 = smov [#allocation6]   ;;  %s3393_s6 = smov [#allocation7]  }
  0x11   : > { %p3231_p12 = pnand %p3230_p10, %p39_p5  ;;  %s3074_s7 = sshll.u32 %s150_s4, 5 }
  0x12   : > { %s3218_s8 = sshll.u32 %s3390_s15, 5  ;;  %s154_s18 = scalar_lea.vmem [#allocation2], %s3074_s7 }
  0x13   : > { %3233 = dma.hbm_to_smem (!%p3231_p12), %s130_s26, 16, %s3392_s5, [#allocation4]  }
  0x14   : > { %3236 = dma.vmem_to_smem (!%p3231_p12), %s140_s29, 16, %s3393_s6, [#allocation5]  }
  0x15   : > { %s159_s11 = scalar_lea.hbm %s4341_s0, %s3218_s8  ;;  %s162_s19 = sshll.u32 %s154_s18, 4  ;;  %s163_s19 = int_to_ptr.vmem [resolvable:$true] %s162_s19 }
  0x16   : > { %s160_s12 = sshll.u32 %s159_s11, 4  ;;  %s151_s21 = scalar_lea.sflag [#allocation3], %s150_s4  ;;  %s161_s12 = int_to_ptr.hbm [resolvable:$true] %s160_s12 }
  0x17   : > { %s3318_s24 = sshra.s32 %s161_s12, 4  ;;  %p3322_p1 = pneg %p3482_p13  ;;  %s3319_s24 = int_to_ptr.hbm [resolvable:$true] %s3318_s24 }
  0x18   : > { %s3320_s25 = scalar_lea.hbm %s3319_s24, 32  ;;  %s3325_s27 = scalar_lea.hbm %s4341_s0, 64 }
  0x19   : > { %p3321_p0 = scmp.ne.s32.totalorder %s3319_s24, %s3320_s25  ;;  %p3326_p4 = scmp.lt.s32.totalorder %s3319_s24, %s4341_s0 }
  0x1a   : > { %p3327_p6 = scmp.lt.s32.totalorder %s3325_s27, %s3320_s25 }
  0x1b   : > { %p3323_p2 = pnand %p3322_p1, %p3321_p0 }
  0x1c   : > { %p3328_p7 = por %p3327_p6, %p3326_p4 }
  0x1d   : > { %p3324_p3 = pneg %p3323_p2 }
  0x1f   : > { %p3329_p10 = pnand %p3328_p7, %p3324_p3 }
  0x21   : > { %3332 = shalt.err (!%p3329_p10)
}
  0x22   : > { %s3394_s4 = smov 128   ;;  %s3395_s5 = smov 8  }
  0x23   : > { %3240 = dma.hbm_to_vmem [thread:$0]  (!%p3482_p13), %s161_s12, 512, %s163_s19, %s151_s21, %s3394_s4, %s3394_s4, %s3395_s5  }
  0x24   : > { %174 = sbr.rel (%p3465_p9) target bundleno = 865 (0x361), region = 32 }
  0x29   : > { %s176_s6 = sand.u32 1, %s3382_s13  }
  0x2a   : > { %s3078_s7 = sshll.u32 %s176_s6, 5  ;;  %s177_s8 = scalar_lea.sflag [#allocation3], %s176_s6 }
  0x2b   : > { %s3504_s9 = scalar_lea.vmem [#allocation2], %s3078_s7 }
  0x2c   : > { %3365 = dma.done.wait (%p3461_p8), %s177_s8, 512  }
  0x2d   : > { %3367 = vsyncadd (%p3461_p8), %s177_s8, 4294966784 }
  0x2e   : > { %3369 = dma.done.wait (%p39_p5), [#allocation4], 16  }
  0x2f   : > { %3371 = vsyncadd (%p39_p5), [#allocation4], 4294967280 }
  0x30   : > { %3373 = dma.done.wait (%p39_p5), [#allocation5], 16  }
  0x31   : > { %3375 = vsyncadd (%p39_p5), [#allocation5], 4294967280 }
  0x32   : > { %196 = sfence }
  0x33   : > { %v225_v0 = vlaneseq  ;;  %s3101_s22 = sld [smem:[#allocation6 + $0x1]]  ;;  %v3531_v5 = vld [vmem:[%s3504_s9] sm:$0xff]  ;;  %v3534_v6 = vld [vmem:[%s3504_s9 + $0x8] sm:$0xff]  ;;  %v3537_v7 = vld [vmem:[%s3504_s9 + $0x10] sm:$0xff]  ;;  %vm294_vm0 = vcmask 130048   ;;  %v4347_v13 = vmov 0.0  }
  0x34   : > { %s3102_s23 = sld [smem:[#allocation6 + $0x9]]  ;;  %v3540_v8 = vld [vmem:[%s3504_s9 + $0x18] sm:$0xff]  ;;  %v4345_v23 = vmov 1.0   ;;  %p215_p5 = scmp.lt.s32.totalorder %s3437_s16, 1  ;;  %vm1633_vm13 = vcmask 252928   ;;  %vm1637_vm14 = vcmask 251904  }
  0x35   : > { %v3518_v1 = vshrl.u32 %v225_v0, 7  ;;  %s3520_s30 = sld [smem:[#allocation6]]  ;;  %v3527_v3 = vand.u32 127, %v225_v0 }
  0x36   : > { %s3522_s10 = sld [smem:[#allocation6 + $0x8]]  ;;  %s4437_s16 = smov (!%p215_p5, %s3437_s16), 1 }
  0x37   : > { %v3525_v2 = vadd.s32 8, %v3518_v1  ;;  %v258_v4 = vmul.u32 2, %v3518_v1  ;;  %s3689_s11 = sld [smem:[#allocation6 + $0x3]]  ;;  %s3219_s5 = sshll.u32 %s4437_s16, 6 }
  0x38   : > { %s3693_s12 = sld [smem:[#allocation6 + $0xb]]  ;;  %s4237_s8 = scalar_lea.vmem %s4344_s3, %s3219_s5 }
  0x39   : > { %v259_v9 = vmul.u32 2, %v3525_v2  ;;  %vm3544_vm1 = vcmp.eq.s32.totalorder %v3527_v3, %v258_v4  ;;  %v285_v11 = vstv %s3101_s22  ;;  %v3094_v12 = vadd.s32 4294967295, %v258_v4  ;;  %s3712_s18 = sld [smem:[#allocation6 + $0x2]] }
  0x3a   : > { %v3098_v14 = vsel %vm3544_vm1, 1.0, %v4347_v13  ;;  %v286_v15 = vmul.f32 %v285_v11, %v3531_v5  ;;  %v289_v16 = vstv %s3102_s23  ;;  %v287_v17 = vmul.f32 %v285_v11, %v3534_v6  ;;  %s3715_s19 = sld [smem:[#allocation6 + $0xa]] }
  0x3b   : > { %vm3554_vm2 = vcmp.eq.s32.totalorder %v3527_v3, %v259_v9  ;;  %v3558_v19 = vsub.f32 %v3098_v14, %v3098_v14  ;;  %v290_v20 = vmul.f32 %v3537_v7, %v289_v16  ;;  %v291_v21 = vmul.f32 %v3540_v8, %v289_v16  ;;  %s3157_s21 = sld [smem:[#allocation6 + $0x5]] }
  0x3c   : > { %v3099_v22 = vsel %vm3554_vm2, 1.0, %v4347_v13  ;;  %3105 = vmatpush.msk.msra.mxu3 %vm3554_vm2, %v4345_v23  ;;  %3103 = vmatpush.msk.msra.mxu0 %vm3554_vm2, %v4345_v23  ;;  %v3095_v24 = vadd.s32 4294967295, %v259_v9  ;;  %vm3572_vm3 = vcmp.eq.s32.totalorder %v3527_v3, %v3094_v12  ;;  %v275_v26 = vstv %s3520_s30  ;;  %s3158_s24 = sld [smem:[#allocation6 + $0xd]] }
  0x3d   : > { %v3577_v27 = vsub.f32 %v3099_v22, %v3099_v22  ;;  %v292_v28 = vadd.f32 %v290_v20, %v286_v15  ;;  %v3580_v29 = vand.u32 4294901760, %v3558_v19  ;;  %v293_v30 = vadd.f32 %v291_v21, %v287_v17  ;;  %s4012_s25 = sld [smem:[#allocation6 + $0x4]] }
  0x3e   : > { %3106 = vmatpush.msk.msra.mxu3 %vm3544_vm1, %v4345_v23  ;;  %3104 = vmatpush.msk.msra.mxu0 %vm3544_vm1, %v4345_v23  ;;  %vm3589_vm4 = vcmp.eq.s32.totalorder %v3527_v3, %v3095_v24  ;;  %v276_v32 = vmul.f32 %v275_v26, %v3531_v5  ;;  %v279_v33 = vstv %s3522_s10  ;;  %v3096_v34 = vsel %vm3572_vm3, 1.0, %v4347_v13  ;;  %s4015_s26 = sld [smem:[#allocation6 + $0xc]] }
  0x3f   : > { %387 = vmatpush.msra.mxu2 %v3577_v27  ;;  %v296_v35 = vsel %vm294_vm0, %v292_v28, 0  ;;  %v3601_v36 = vand.u32 4294901760, %v3577_v27  ;;  %v359_v37 = vsub.f32 %v3558_v19, %v3580_v29  ;;  %v299_v38 = vsel %vm294_vm0, %v293_v30, 0  ;;  %s4070_s15 = sld [smem:[#allocation6 + $0x7]] }
  0x40   : > { %v3606_v39 = vand.u32 4294901760, %v296_v35  ;;  %v3608_v40 = vand.u32 4294901760, %v299_v38  ;;  %v3097_v41 = vsel %vm3589_vm4, 1.0, %v4347_v13  ;;  %v280_v42 = vmul.f32 %v3537_v7, %v279_v33  ;;  %s4079_s27 = sld [smem:[#allocation6 + $0xf]] }
  0x41   : > { %390 = vmatpush.msra.mxu2 %v3558_v19  ;;  %v353_v43 = vsub.f32 %v3577_v27, %v3601_v36  ;;  %v3617_v44 = vand.u32 4294901760, %v359_v37  ;;  %v3619_v45 = vsub.f32 %v3097_v41, %v3097_v41  ;;  %450 = vmatpush.msrb.mxu0 %v3601_v36  ;;  %v3622_v46 = vsub.f32 %v3096_v34, %v3096_v34  ;;  %s4119_s28 = sld [smem:[#allocation6 + $0x6]] }
  0x42   : > { %v320_v47 = vsub.f32 %v296_v35, %v3606_v39  ;;  %v328_v48 = vsub.f32 %v299_v38, %v3608_v40  ;;  %v282_v49 = vadd.f32 %v280_v42, %v276_v32  ;;  %v277_v50 = vmul.f32 %v275_v26, %v3534_v6  ;;  %s4122_s29 = sld [smem:[#allocation6 + $0xe]] }
  0x43   : > { %4390 = vst [vmem:[#allocation11_spill] sm:$0xff] %v3619_v45  ;;  %3109 = vmatpush.msk.msrb.mxu2 %vm3589_vm4, %v4345_v23  ;;  %v3630_v51 = vand.u32 4294901760, %v353_v43  ;;  %v3633_v52 = vand.u32 4294901760, %v3619_v45  ;;  %v3636_v53 = vand.u32 4294901760, %v3622_v46  ;;  %454 = vmatpush.msrb.mxu0 %v3580_v29  ;;  %v281_v54 = vmul.f32 %v3540_v8, %v279_v33  ;;  %s1627_s4 = sld [smem:[#allocation7]] }
  0x44   : > { %4391 = vst [vmem:[#allocation12_spill] sm:$0xff] %v3622_v46  ;;  %393 = vmatmul.f32.vlgmr.msra.gmra.mxu2 %v320_v47  ;;  %v321_v55 = vand.u32 4294901760, %v320_v47  ;;  %v492_v56 = vsel %vm294_vm0, %v282_v49, 0  ;;  %v329_v62 = vand.u32 4294901760, %v328_v48  ;;  %v698_v28 = vstv %s3689_s11  ;;  %s3211_s16 = sld [smem:[#allocation7 + $0x1]] }
  0x45   : > { %4392 = vst [vmem:[#allocation13_spill] sm:$0xff] %v3633_v52  ;;  %355 = vmatpush.msra.mxu1 %v3630_v51  ;;  %3110 = vmatpush.msk.msrb.mxu2 %vm3572_vm3, %v4345_v23  ;;  %v549_v57 = vsub.f32 %v3619_v45, %v3633_v52  ;;  %v3647_v58 = vand.u32 4294901760, %v492_v56  ;;  %v555_v59 = vsub.f32 %v3622_v46, %v3636_v53  ;;  %v702_v30 = vstv %s3693_s12 }
  0x46   : > { %4393 = vst [vmem:[#allocation14_spill] sm:$0xff] %v3636_v53  ;;  %v283_v60 = vadd.f32 %v281_v54, %v277_v50  ;;  %423 = vmatmul.f32.vlgmr.msra.gmra.mxu3 %v321_v55  ;;  %v322_v61 = vsub.f32 %v320_v47, %v321_v55  ;;  %v330_v15 = vsub.f32 %v328_v48, %v329_v62  ;;  %v688_v35 = vstv %s3712_s18 }
  0x47   : > { %646 = vmatpush.msra.mxu2 %v3633_v52  ;;  %361 = vmatpush.msra.mxu1 %v3617_v44  ;;  %v3653_v63 = vand.u32 4294901760, %v549_v57  ;;  %v3656_v0 = vsub.f32 %v492_v56, %v3647_v58  ;;  %v3658_v4 = vand.u32 4294901760, %v555_v59  ;;  %v699_v32 = vmul.f32 %v698_v28, %v3531_v5 }
  0x48   : > { %v495_v9 = vsel %vm294_vm0, %v283_v60, 0  ;;  %v323_v11 = vand.u32 4294901760, %v322_v61  ;;  %363 = vmatmul.f32.vlgmr.msra.gmra.mxu1 %v3606_v39  ;;  %v331_v20 = vand.u32 4294901760, %v330_v15  ;;  %v703_v33 = vmul.f32 %v3537_v7, %v702_v30 }
  0x49   : > { %v3662_v12 = vand.u32 4294901760, %v495_v9  ;;  %650 = vmatpush.msra.mxu2 %v3636_v53  ;;  %551 = vmatpush.msrb.mxu3 %v3653_v63  ;;  %v517_v14 = vand.u32 4294901760, %v3656_v0  ;;  %v692_v37 = vstv %s3715_s19  ;;  %v704_v41 = vmul.f32 %v3540_v8, %v702_v30 }
  0x4a   : > { %3107 = vmatpush.msk.msrb.mxu1 %vm3554_vm2, %v4345_v23  ;;  %324 = vmatmul.f32.vlgmr.msra.gmra.mxu0 %v323_v11  ;;  %v705_v34 = vadd.f32 %v703_v33, %v699_v32  ;;  %v689_v42 = vmul.f32 %v688_v35, %v3531_v5  ;;  %v693_v43 = vmul.f32 %v3537_v7, %v692_v37 }
  0x4b   : > { %557 = vmatpush.msrb.mxu3 %v3658_v4  ;;  %v518_v16 = vsub.f32 %v3656_v0, %v517_v14  ;;  %v3676_v17 = vsub.f32 %v495_v9, %v3662_v12  ;;  %583 = vmatpush.msra.mxu0 %v3619_v45  ;;  %v690_v55 = vmul.f32 %v688_v35, %v3534_v6 }
  0x4c   : > { %3108 = vmatpush.msk.msrb.mxu1 %vm3544_vm1, %v4345_v23  ;;  %398 = vmatmul.f32.gmra.mxu2 %v328_v48  ;;  %v708_v38 = vsel %vm294_vm0, %v705_v34, 0  ;;  %v695_v48 = vadd.f32 %v693_v43, %v689_v42  ;;  %v694_v56 = vmul.f32 %v3540_v8, %v692_v37 }
  0x4d   : > { %3113 = vmatpush.msk.msra.mxu3 %vm3589_vm4, %v4345_v23  ;;  %586 = vmatpush.msra.mxu0 %v3622_v46  ;;  %v519_v21 = vand.u32 4294901760, %v518_v16  ;;  %v525_v22 = vand.u32 4294901760, %v3676_v17 }
  0x4e   : > { %3111 = vmatpush.msk.msra.mxu1 %vm3589_vm4, %v4345_v23  ;;  %429 = vmatmul.f32.gmra.mxu3 %v329_v62  ;;  %v904_v54 = vsel %vm294_vm0, %v695_v48, 0  ;;  %v696_v60 = vadd.f32 %v694_v56, %v690_v55 }
  0x4f   : > { %3114 = vmatpush.msk.msra.mxu3 %vm3572_vm3, %v4345_v23  ;;  %v526_v24 = vsub.f32 %v3676_v17, %v525_v22  ;;  %v927_v59 = vand.u32 4294901760, %v904_v54 }
  0x50   : > { %367 = vmatmul.f32.gmra.mxu1 %v3608_v40  ;;  %v907_v9 = vsel %vm294_vm0, %v696_v60, 0 }
  0x51   : > { %3112 = vmatpush.msk.msra.mxu1 %vm3572_vm3, %v4345_v23  ;;  %v527_v26 = vand.u32 4294901760, %v526_v24  ;;  %v935_v15 = vand.u32 4294901760, %v907_v9 }
  0x52   : > { %332 = vmatmul.f32.gmra.mxu0 %v331_v20 }
  0x53   : > { %v936_v20 = vsub.f32 %v907_v9, %v935_v15 }
  0x54   : > { %520 = vmatmul.f32.vlgmr.msrb.gmra.mxu2 %v519_v21 }
  0x55   : > { %799 = vmatpush.msrb.mxu2 %v3577_v27  ;;  %v937_v24 = vand.u32 4294901760, %v936_v20 }
  0x56   : > { %559 = vmatmul.f32.vlgmr.msrb.gmra.mxu3 %v3647_v58 }
  0x57   : > { %802 = vmatpush.msrb.mxu2 %v3558_v19  ;;  %3121 = vmatpush.msk.msrb.mxu3 %vm3554_vm2, %v4345_v23 }
  0x58   : > { %483 = vmatmul.f32.vlgmr.msrb.gmra.mxu1 %v3606_v39 }
  0x59   : > { %767 = vmatpush.msrb.mxu1 %v3630_v51  ;;  %3122 = vmatpush.msk.msrb.mxu3 %vm3544_vm1, %v4345_v23 }
  0x5a   : > { %456 = vmatmul.f32.vlgmr.msrb.gmra.mxu0 %v3606_v39  ;;  %v700_v39 = vmul.f32 %v698_v28, %v3534_v6 }
  0x5b   : > { %3119 = vmatpush.msk.msrb.mxu0 %vm3554_vm2, %v4345_v23  ;;  %773 = vmatpush.msrb.mxu1 %v3617_v44 }
  0x5c   : > { %528 = vmatmul.f32.gmra.mxu2 %v527_v26  ;;  %v706_v47 = vadd.f32 %v704_v41, %v700_v39  ;;  %v938_v26 = vsub.f32 %v936_v20, %v937_v24 }
  0x5d   : > { %3120 = vmatpush.msk.msrb.mxu0 %vm3544_vm1, %v4345_v23 }
  0x5e   : > { %563 = vmatmul.f32.gmra.mxu3 %v3662_v12  ;;  %v711_v50 = vsel %vm294_vm0, %v706_v47, 0  ;;  %v939_v28 = vand.u32 4294901760, %v938_v26 }
  0x60   : > { %487 = vmatmul.f32.gmra.mxu1 %v3608_v40 }
  0x62   : > { %460 = vmatmul.f32.gmra.mxu0 %v3608_v40  ;;  %v731_v40 = vand.u32 4294901760, %v708_v38 }
  0x64   : > { %652 = vmatmul.f32.vlgmr.msra.gmra.mxu2 %v3647_v58  ;;  %v732_v49 = vsub.f32 %v708_v38, %v731_v40 }
  0x65   : > { %3125 = vmatpush.msk.msra.mxu2 %vm3589_vm4, %v4345_v23 }
  0x66   : > { %679 = vmatmul.f32.vlgmr.msra.gmra.mxu3 %v3647_v58  ;;  %v733_v57 = vand.u32 4294901760, %v732_v49  ;;  %v739_v58 = vand.u32 4294901760, %v711_v50 }
  0x67   : > { %3126 = vmatpush.msk.msra.mxu2 %vm3572_vm3, %v4345_v23  ;;  %963 = vmatpush.msra.mxu3 %v3653_v63 }
  0x68   : > { %619 = vmatmul.f32.vlgmr.msra.gmra.mxu1 %v517_v14  ;;  %v734_v61 = vsub.f32 %v732_v49, %v733_v57  ;;  %v740_v62 = vsub.f32 %v711_v50, %v739_v58 }
  0x69   : > { %3123 = vmatpush.msk.msra.mxu1 %vm3554_vm2, %v4345_v23  ;;  %969 = vmatpush.msra.mxu3 %v3658_v4 }
  0x6a   : > { %589 = vmatmul.f32.vlgmr.msra.gmra.mxu0 %v3656_v0  ;;  %v928_v0 = vsub.f32 %v904_v54, %v927_v59  ;;  %v735_v11 = vand.u32 4294901760, %v734_v61  ;;  %v741_v14 = vand.u32 4294901760, %v740_v62 }
  0x6b   : > { %862 = vmatpush.msra.mxu0 %v3601_v36  ;;  %3124 = vmatpush.msk.msra.mxu1 %vm3544_vm1, %v4345_v23 }
  0x6c   : > { %656 = vmatmul.f32.gmra.mxu2 %v3662_v12  ;;  %v742_v16 = vsub.f32 %v740_v62, %v741_v14 }
  0x6d   : > { %866 = vmatpush.msra.mxu0 %v3580_v29 }
  0x6e   : > { %683 = vmatmul.f32.gmra.mxu3 %v3662_v12  ;;  %v929_v12 = vand.u32 4294901760, %v928_v0  ;;  %v743_v21 = vand.u32 4294901760, %v742_v16 }
  0x70   : > { %625 = vmatmul.f32.gmra.mxu1 %v525_v22 }
  0x72   : > { %594 = vmatmul.f32.gmra.mxu0 %v3676_v17  ;;  %v930_v17 = vsub.f32 %v928_v0, %v929_v12 }
  0x74   : > { %805 = vmatmul.f32.vlgmr.msrb.gmra.mxu2 %v732_v49  ;;  %v931_v22 = vand.u32 4294901760, %v930_v17 }
  0x75   : > { %1058 = vmatpush.msrb.mxu2 %v3633_v52 }
  0x76   : > { %835 = vmatmul.f32.vlgmr.msrb.gmra.mxu3 %v733_v57 }
  0x77   : > { %1062 = vmatpush.msrb.mxu2 %v3636_v53  ;;  %3129 = vmatpush.msk.msrb.mxu3 %vm3589_vm4, %v4345_v23 }
  0x78   : > { %775 = vmatmul.f32.vlgmr.msrb.gmra.mxu1 %v731_v40 }
  0x79   : > { %3127 = vmatpush.msk.msrb.mxu1 %vm3589_vm4, %v4345_v23  ;;  %3130 = vmatpush.msk.msrb.mxu3 %vm3572_vm3, %v4345_v23 }
  0x7a   : > { %736 = vmatmul.f32.vlgmr.msrb.gmra.mxu0 %v735_v11 }
  0x7b   : > { %995 = vmatpush.msrb.mxu0 %v3619_v45  ;;  %3128 = vmatpush.msk.msrb.mxu1 %vm3572_vm3, %v4345_v23 }
  0x7c   : > { %810 = vmatmul.f32.gmra.mxu2 %v740_v62 }
  0x7d   : > { %998 = vmatpush.msrb.mxu0 %v3622_v46 }
  0x7e   : > { %841 = vmatmul.f32.gmra.mxu3 %v741_v14 }
  0x80   : > { %779 = vmatmul.f32.gmra.mxu1 %v739_v58 }
  0x82   : > { %744 = vmatmul.f32.gmra.mxu0 %v743_v21 }
  0x84   : > { %932 = vmatmul.f32.vlgmr.msra.gmra.mxu2 %v931_v22 }
  0x86   : > { %971 = vmatmul.f32.vlgmr.msra.gmra.mxu3 %v927_v59 }
  0x88   : > { %895 = vmatmul.f32.vlgmr.msra.gmra.mxu1 %v731_v40 }
  0x8a   : > { %868 = vmatmul.f32.vlgmr.msra.gmra.mxu0 %v731_v40 }
  0x8c   : > { %940 = vmatmul.f32.gmra.mxu2 %v939_v28 }
  0x8e   : > { %975 = vmatmul.f32.gmra.mxu3 %v935_v15 }
  0x90   : > { %899 = vmatmul.f32.gmra.mxu1 %v739_v58 }
  0x92   : > { %872 = vmatmul.f32.gmra.mxu0 %v739_v58 }
  0x94   : > { %1064 = vmatmul.f32.vlgmr.msrb.gmra.mxu2 %v927_v59 }
  0x96   : > { %1091 = vmatmul.f32.vlgmr.msrb.gmra.mxu3 %v927_v59 }
  0x98   : > { %1031 = vmatmul.f32.vlgmr.msrb.gmra.mxu1 %v929_v12 }
  0x9a   : > { %1001 = vmatmul.f32.vlgmr.msrb.gmra.mxu0 %v928_v0 }
  0x9c   : > { %1068 = vmatmul.f32.gmra.mxu2 %v935_v15 }
  0x9e   : > { %1095 = vmatmul.f32.gmra.mxu3 %v935_v15 }
  0xa0   : > { %1037 = vmatmul.f32.gmra.mxu1 %v937_v24 }
  0xa2   : > { %1006 = vmatmul.f32.gmra.mxu0 %v936_v20 }
  0xc5   : > { %v364_v30 = vpop.f32.mrf.mxu1 }
  0xc7   : > { %v325_v32 = vpop.f32.mrf.mxu0  ;;  %v394_v33 = vpop.f32.mrf.mxu2 }
  0xc8   : > { %v365_v9 = vadd.f32 %v364_v30, %v325_v32 }
  0xc9   : > { %v424_v34 = vpop.f32.mrf.mxu3 }
  0xca   : > { %v395_v16 = vadd.f32 %v394_v33, %v365_v9 }
  0xcc   : > { %v425_v21 = vadd.f32 %v424_v34, %v395_v16 }
  0xcd   : > { %v368_v35 = vpop.f32.mrf.mxu1 }
  0xcf   : > { %v333_v37 = vpop.f32.mrf.mxu0  ;;  %v399_v38 = vpop.f32.mrf.mxu2 }
  0xd0   : > { %v369_v62 = vadd.f32 %v368_v35, %v333_v37 }
  0xd1   : > { %v430_v39 = vpop.f32.mrf.mxu3 }
  0xd2   : > { %v400_v12 = vadd.f32 %v399_v38, %v369_v62 }
  0xd4   : > { %v431_v17 = vadd.f32 %v430_v39, %v400_v12 }
  0xd5   : > { %v484_v41 = vpop.f32.mrf.mxu1 }
  0xd7   : > { %v457_v42 = vpop.f32.mrf.mxu0  ;;  %v521_v43 = vpop.f32.mrf.mxu2 }
  0xd8   : > { %v458_v28 = vadd.f32 %v457_v42, %v425_v21 }
  0xd9   : > { %v560_v40 = vpop.f32.mrf.mxu3 }
  0xda   : > { %v485_v52 = vadd.f32 %v484_v41, %v458_v28 }
  0xdc   : > { %v522_v45 = vadd.f32 %v521_v43, %v485_v52 }
  0xdd   : > { %v488_v47 = vpop.f32.mrf.mxu1 }
  0xde   : > { %v561_v34 = vadd.f32 %v560_v40, %v522_v45 }
  0xdf   : > { %v461_v48 = vpop.f32.mrf.mxu0  ;;  %v529_v49 = vpop.f32.mrf.mxu2 }
  0xe0   : > { %v462_v22 = vadd.f32 %v461_v48, %v431_v17  ;;  %v4394_v17 = vmov 0.0  }
  0xe1   : > { %v564_v50 = vpop.f32.mrf.mxu3 }
  0xe2   : > { %v489_v53 = vadd.f32 %v488_v47, %v462_v22 }
  0xe4   : > { %v530_v37 = vadd.f32 %v529_v49, %v489_v53  ;;  %v3780_v53 = vmul.u32 2, %v3527_v3 }
  0xe5   : > { %v620_v54 = vpop.f32.mrf.mxu1 }
  0xe6   : > { %v565_v39 = vadd.f32 %v564_v50, %v530_v37  ;;  %vm246_vm5 = vcmp.eq.s32.totalorder %v3518_v1, %v3780_v53  ;;  %vm247_vm6 = vcmp.eq.s32.totalorder %v3525_v2, %v3780_v53 }
  0xe7   : > { %v590_v55 = vpop.f32.mrf.mxu0  ;;  %v653_v56 = vpop.f32.mrf.mxu2 }
  0xe8   : > { %v591_v42 = vadd.f32 %v590_v55, %v561_v34 }
  0xe9   : > { %v680_v57 = vpop.f32.mrf.mxu3 }
  0xea   : > { %v621_v52 = vadd.f32 %v620_v54, %v591_v42 }
  0xec   : > { %v654_v40 = vadd.f32 %v653_v56, %v621_v52 }
  0xed   : > { %v626_v58 = vpop.f32.mrf.mxu1 }
  0xee   : > { %v681_v21 = vadd.f32 %v680_v57, %v654_v40 }
  0xef   : > { %v595_v59 = vpop.f32.mrf.mxu0  ;;  %v657_v60 = vpop.f32.mrf.mxu2 }
  0xf0   : > { %v596_v48 = vadd.f32 %v595_v59, %v565_v39  ;;  %v3795_v28 = vand.u32 4294901760, %v681_v21  ;;  %v3805_v39 = vadd.s32 16, %v3518_v1 }
  0xf1   : > { %v684_v61 = vpop.f32.mrf.mxu3 }
  0xf2   : > { %v627_v41 = vadd.f32 %v626_v58, %v596_v48  ;;  %v3785_v58 = vsel %vm246_vm5, 1.0, %v4394_v17  ;;  %vm248_vm7 = vcmp.eq.s32.totalorder %v3805_v39, %v3780_v53 }
  0xf5   : > { %v776_v0 = vpop.f32.mrf.mxu1 }
  0xf7   : > { %v737_v11 = vpop.f32.mrf.mxu0  ;;  %v806_v14 = vpop.f32.mrf.mxu2 }
  0xf8   : > { %v777_v23 = vadd.f32 %v776_v0, %v737_v11 }
  0xf9   : > { %v836_v15 = vpop.f32.mrf.mxu3 }
  0xfa   : > { %v807_v46 = vadd.f32 %v806_v14, %v777_v23  ;;  %v658_v14 = vadd.f32 %v657_v60, %v627_v41  ;;  %v1100_v60 = vsel %vm294_vm0, %v3785_v58, 0 }
  0xfb   : > { %v3791_v56 = vsub.f32 %v1100_v60, %v1100_v60 }
  0xfc   : > { %v837_v38 = vadd.f32 %v836_v15, %v807_v46 }
  0xfd   : > { %v780_v20 = vpop.f32.mrf.mxu1 }
  0xff   : > { %v745_v24 = vpop.f32.mrf.mxu0  ;;  %v811_v26 = vpop.f32.mrf.mxu2 }
 0x100   : > { %v781_v62 = vadd.f32 %v780_v20, %v745_v24 }
 0x101   : > { %v842_v13 = vpop.f32.mrf.mxu3 }
 0x102   : > { %v812_v12 = vadd.f32 %v811_v26, %v781_v62 }
 0x104   : > { %v843_v23 = vadd.f32 %v842_v13, %v812_v12  ;;  %v685_v13 = vadd.f32 %v684_v61, %v658_v14 }
 0x105   : > { %v896_v35 = vpop.f32.mrf.mxu1 }
 0x106   : > { %v3789_v24 = vand.u32 4294901760, %v685_v13 }
 0x107   : > { %v869_v30 = vpop.f32.mrf.mxu0  ;;  %v933_v32 = vpop.f32.mrf.mxu2 }
 0x108   : > { %v870_v9 = vadd.f32 %v869_v30, %v837_v38  ;;  %v1441_v57 = vsub.f32 %v685_v13, %v3789_v24  ;;  %v3799_v38 = vsel %vm247_vm6, 1.0, %v4394_v17 }
 0x109   : > { %v972_v33 = vpop.f32.mrf.mxu3 }
 0x10a   : > { %v897_v0 = vadd.f32 %v896_v35, %v870_v9  ;;  %v1447_v9 = vsub.f32 %v681_v21, %v3795_v28  ;;  %v1442_v42 = vand.u32 4294901760, %v1441_v57 }
 0x10c   : > { %v934_v46 = vadd.f32 %v933_v32, %v897_v0  ;;  %v1448_v41 = vand.u32 4294901760, %v1447_v9 }
 0x10d   : > { %v900_v16 = vpop.f32.mrf.mxu1 }
 0x10e   : > { %v973_v50 = vadd.f32 %v972_v33, %v934_v46  ;;  %v3802_v33 = vand.u32 4294901760, %v3791_v56  ;;  %v1443_v46 = vsub.f32 %v1441_v57, %v1442_v42 }
 0x10f   : > { %v873_v11 = vpop.f32.mrf.mxu0  ;;  %v941_v47 = vpop.f32.mrf.mxu2 }
 0x110   : > { %v874_v43 = vadd.f32 %v873_v11, %v843_v23  ;;  %v1132_v11 = vsub.f32 %v3791_v56, %v3802_v33  ;;  %v1444_v13 = vand.u32 4294901760, %v1443_v46 }
 0x111   : > { %v976_v49 = vpop.f32.mrf.mxu3 }
 0x112   : > { %v901_v55 = vadd.f32 %v900_v16, %v874_v43  ;;  %v1103_v16 = vsel %vm294_vm0, %v3799_v38, 0  ;;  %v3820_v43 = vsel %vm248_vm7, 1.0, %v4394_v17  ;;  %v3822_v14 = vand.u32 4294901760, %v1132_v11 }
 0x113   : > { %v3816_v23 = vsub.f32 %v1103_v16, %v1103_v16 }
 0x114   : > { %v942_v54 = vadd.f32 %v941_v47, %v901_v55 }
 0x115   : > { %v1032_v45 = vpop.f32.mrf.mxu1  ;;  %v3828_v55 = vand.u32 4294901760, %v3816_v23 }
 0x116   : > { %v977_v35 = vadd.f32 %v976_v49, %v942_v54 }
 0x117   : > { %v1002_v59 = vpop.f32.mrf.mxu0  ;;  %v1065_v15 = vpop.f32.mrf.mxu2  ;;  %v1140_v54 = vsub.f32 %v3816_v23, %v3828_v55 }
 0x118   : > { %v1003_v3 = vadd.f32 %v1002_v59, %v973_v50  ;;  %v1449_v50 = vsub.f32 %v1447_v9, %v1448_v41 }
 0x119   : > { %v1092_v20 = vpop.f32.mrf.mxu3 }
 0x11a   : > { %v1033_v22 = vadd.f32 %v1032_v45, %v1003_v3  ;;  %v3825_v45 = vadd.s32 24, %v3518_v1 }
 0x11c   : > { %v1066_v26 = vadd.f32 %v1065_v15, %v1033_v22  ;;  %v1106_v15 = vsel %vm294_vm0, %v3820_v43, 0  ;;  %vm249_vm8 = vcmp.eq.s32.totalorder %v3825_v45, %v3780_v53 }
 0x11d   : > { %v1038_v30 = vpop.f32.mrf.mxu1  ;;  %v3839_v22 = vsub.f32 %v1106_v15, %v1106_v15 }
 0x11e   : > { %v1093_v61 = vadd.f32 %v1092_v20, %v1066_v26  ;;  %v1450_v20 = vand.u32 4294901760, %v1449_v50 }
 0x11f   : > { %v1007_v37 = vpop.f32.mrf.mxu0  ;;  %v1069_v62 = vpop.f32.mrf.mxu2 }
 0x120   : > { %v1008_v32 = vadd.f32 %v1007_v37, %v977_v35  ;;  %v3808_v48 = vand.u32 4294901760, %v1093_v61  ;;  %v3844_v35 = vsel %vm249_vm8, 1.0, %v4394_v17  ;;  %v3852_v37 = vand.u32 4294901760, %v3839_v22 }
 0x121   : > { %v1096_v12 = vpop.f32.mrf.mxu3 }
 0x122   : > { %v1039_v34 = vadd.f32 %v1038_v30, %v1008_v32  ;;  %v1183_v49 = vsub.f32 %v1093_v61, %v3808_v48  ;;  %v3849_v61 = vand.u32 4294901760, %v1140_v54  ;;  %v1109_v32 = vsel %vm294_vm0, %v3844_v35, 0 }
 0x124   : > { %v1070_v0 = vadd.f32 %v1069_v62, %v1039_v34  ;;  %v1184_v59 = vand.u32 4294901760, %v1183_v49  ;;  %v3085_v62 = vadd.s32 4294967295, %v3780_v53  ;;  %v1148_v34 = vsub.f32 %v3839_v22, %v3852_v37 }
 0x126   : > { %v1097_v47 = vadd.f32 %v1096_v12, %v1070_v0  ;;  %v1185_v60 = vsub.f32 %v1183_v49, %v1184_v59  ;;  %v3861_v12 = vsub.f32 %v1109_v32, %v1109_v32  ;;  %vm234_vm9 = vcmp.eq.s32.totalorder %v3518_v1, %v3085_v62 }
 0x127   : > { %v3869_v53 = vand.u32 4294901760, %v1148_v34  ;;  %vm235_vm10 = vcmp.eq.s32.totalorder %v3525_v2, %v3085_v62  ;;  %vm236_vm11 = vcmp.eq.s32.totalorder %v3805_v39, %v3085_v62  ;;  %vm237_vm12 = vcmp.eq.s32.totalorder %v3825_v45, %v3085_v62 }
 0x128   : > { %v1125_v52 = vand.u32 4294901760, %v1097_v47  ;;  %v1186_v30 = vand.u32 4294901760, %v1185_v60  ;;  %v3938_v50 = vsel %vm237_vm12, 1.0, %v4394_v17  ;;  %v1650_v60 = vstv %s3157_s21 }
 0x129   : > { %4404 = vst [vmem:[#allocation23_spill] sm:$0xff] %v3938_v50 }
 0x12a   : > { %v1177_v40 = vsub.f32 %v1097_v47, %v1125_v52  ;;  %1126 = vmatpush.msra.mxu0 %v1125_v52  ;;  %1261 = vmatpush.msra.mxu3 %v1125_v52  ;;  %v3912_v47 = vsel %vm236_vm11, 1.0, %v4394_v17 }
 0x12b   : > { %4400 = vst [vmem:[#allocation20_spill] sm:$0xff] %v3912_v47  ;;  %v1370_v39 = vsel %vm294_vm0, %v3912_v47, 0 }
 0x12c   : > { %1128 = vmatpush.msra.mxu0 %v3808_v48  ;;  %1221 = vmatpush.msra.mxu2 %v1177_v40  ;;  %v1178_v3 = vand.u32 4294901760, %v1177_v40 }
 0x12d   : > { %1263 = vmatpush.msra.mxu3 %v3808_v48  ;;  %1134 = vmatmul.f32.vlgmr.msra.gmra.mxu0 %v3822_v14 }
 0x12e   : > { %1224 = vmatpush.msra.mxu2 %v1183_v49  ;;  %v1179_v21 = vsub.f32 %v1177_v40, %v1178_v3  ;;  %1306 = vmatpush.msrb.mxu0 %v1178_v3  ;;  %v3932_v40 = vsub.f32 %v1370_v39, %v1370_v39 }
 0x12f   : > { %1445 = vmatpush.msrb.mxu3 %v1444_v13  ;;  %1227 = vmatmul.f32.vlgmr.msra.gmra.mxu2 %v3791_v56 }
 0x130   : > { %1390 = vmatpush.msrb.mxu2 %v3789_v24  ;;  %v1180_v26 = vand.u32 4294901760, %v1179_v21  ;;  %1267 = vmatmul.f32.vlgmr.msra.gmra.mxu3 %v3802_v33  ;;  %4403 = vst [vmem:[#allocation22_spill] sm:$0xff] %v3932_v40 }
 0x131   : > { %1451 = vmatpush.msrb.mxu3 %v1450_v20  ;;  %1310 = vmatpush.msrb.mxu0 %v1184_v59  ;;  %v3950_v59 = vand.u32 4294901760, %v3932_v40 }
 0x132   : > { %1392 = vmatpush.msrb.mxu2 %v3795_v28  ;;  %1181 = vmatpush.msra.mxu1 %v1180_v26  ;;  %v1654_v26 = vstv %s3158_s24 }
 0x133   : > { %1607 = vmatpush.msra.mxu3 %v3789_v24  ;;  %1485 = vmatpush.msra.mxu0 %v1441_v57  ;;  %v3872_v57 = vand.u32 4294901760, %v3861_v12  ;;  %4406 = vst [vmem:[#allocation25_spill] sm:$0xff] %v3950_v59  ;;  %v1412_v15 = vsub.f32 %v3932_v40, %v3950_v59  ;;  %v1655_v32 = vmul.f32 %v3537_v7, %v1654_v26 }
 0x134   : > { %1570 = vmatpush.msra.mxu2 %v1442_v42  ;;  %1187 = vmatpush.msra.mxu1 %v1186_v30  ;;  %v1651_v30 = vmul.f32 %v1650_v60, %v3531_v5 }
 0x135   : > { %1609 = vmatpush.msra.mxu3 %v3795_v28  ;;  %1488 = vmatpush.msra.mxu0 %v1447_v9  ;;  %v3875_v9 = vsel %vm234_vm9, 1.0, %v4394_v17  ;;  %v3970_v3 = vand.u32 4294901760, %v1412_v15 }
 0x136   : > { %1574 = vmatpush.msra.mxu2 %v1448_v41  ;;  %1142 = vmatmul.f32.gmra.mxu0 %v3849_v61  ;;  %4395 = vst [vmem:[#allocation15_spill] sm:$0xff] %v3875_v9  ;;  %v1364_v1 = vsel %vm294_vm0, %v3875_v9, 0  ;;  %v1657_v62 = vadd.f32 %v1655_v32, %v1651_v30 }
 0x137   : > { %3131 = vmatmul.msk.f32.vlgmr.msra.gmra.mxu1 %vm294_vm0, %v3785_v58  ;;  %1232 = vmatmul.f32.gmra.mxu2 %v3816_v23  ;;  %v3888_v16 = vsub.f32 %v1364_v1, %v1364_v1  ;;  %4408 = vst [vmem:[#allocation27_spill] sm:$0xff] %v3970_v3  ;;  %v1652_v1 = vmul.f32 %v1650_v60, %v3534_v6 }
 0x138   : > { %1343 = vmatpush.msrb.mxu1 %v1125_v52  ;;  %1273 = vmatmul.f32.gmra.mxu3 %v3828_v55  ;;  %v4402_v52 = vmov 1.0   ;;  %v1660_v34 = vsel %vm294_vm0, %v1657_v62, 0 }
 0x139   : > { %4396 = vst [vmem:[#allocation16_spill] sm:$0xff] %v3888_v16  ;;  %v3897_v42 = vand.u32 4294901760, %v3888_v16 }
 0x13a   : > { %1345 = vmatpush.msrb.mxu1 %v3808_v48  ;;  %v1156_v48 = vsub.f32 %v3861_v12, %v3872_v57 }
 0x13b   : > { %4398 = vst [vmem:[#allocation18_spill] sm:$0xff] %v3897_v42  ;;  %v1396_v2 = vsub.f32 %v3888_v16, %v3897_v42 }
 0x13c   : > { %1525 = vmatpush.msra.mxu1 %v3789_v24  ;;  %v3891_v24 = vand.u32 4294901760, %v1156_v48  ;;  %v1656_v48 = vmul.f32 %v3540_v8, %v1654_v26 }
 0x13d   : > { %v3914_v41 = vand.u32 4294901760, %v1396_v2 }
 0x13e   : > { %1527 = vmatpush.msra.mxu1 %v3795_v28  ;;  %1150 = vmatmul.f32.gmra.mxu0 %v3869_v53  ;;  %v3894_v28 = vsel %vm235_vm10, 1.0, %v4394_v17  ;;  %v1373_v17 = vsel %vm294_vm0, %v3938_v50, 0  ;;  %v1658_v2 = vadd.f32 %v1656_v48, %v1652_v1 }
 0x13f   : > { %3132 = vmatmul.msk.f32.gmra.mxu1 %vm294_vm0, %v3799_v38  ;;  %1237 = vmatmul.f32.gmra.mxu2 %v3839_v22  ;;  %4397 = vst [vmem:[#allocation17_spill] sm:$0xff] %v3894_v28  ;;  %v1367_v0 = vsel %vm294_vm0, %v3894_v28, 0  ;;  %v3964_v13 = vsub.f32 %v1373_v17, %v1373_v17  ;;  %v1644_v17 = vstv %s4015_s26 }
 0x140   : > { %1279 = vmatmul.f32.gmra.mxu3 %v3852_v37  ;;  %v3908_v11 = vsub.f32 %v1367_v0, %v1367_v0  ;;  %v4028_v0 = vand.u32 4294901760, %v1660_v34  ;;  %v1663_v15 = vsel %vm294_vm0, %v1658_v2, 0  ;;  %v1645_v60 = vmul.f32 %v3537_v7, %v1644_v17 }
 0x141   : > { %4407 = vst [vmem:[#allocation26_spill] sm:$0xff] %v3964_v13  ;;  %v3973_v20 = vand.u32 4294901760, %v3964_v13  ;;  %v4045_v30 = vand.u32 4294901760, %v1663_v15  ;;  %v1646_v1 = vmul.f32 %v3540_v8, %v1644_v17  ;;  %v4413_v17 = vld [vmem:[#allocation13_spill] sm:$0xff] }
 0x142   : > { %4399 = vst [vmem:[#allocation19_spill] sm:$0xff] %v3908_v11  ;;  %v3917_v49 = vand.u32 4294901760, %v3908_v11  ;;  %v1684_v39 = vsub.f32 %v1660_v34, %v4028_v0 }
 0x143   : > { %4409 = vst [vmem:[#allocation28_spill] sm:$0xff] %v3973_v20  ;;  %v1420_v21 = vsub.f32 %v3964_v13, %v3973_v20  ;;  %v1692_v34 = vsub.f32 %v1663_v15, %v4045_v30 }
 0x144   : > { %4401 = vst [vmem:[#allocation21_spill] sm:$0xff] %v3917_v49  ;;  %v1404_v46 = vsub.f32 %v3908_v11, %v3917_v49  ;;  %v1685_v26 = vand.u32 4294901760, %v1684_v39 }
 0x145   : > { %v3984_v54 = vand.u32 4294901760, %v1420_v21  ;;  %v1693_v2 = vand.u32 4294901760, %v1692_v34 }
 0x146   : > { %1158 = vmatmul.f32.gmra.mxu0 %v3891_v24  ;;  %v3947_v45 = vand.u32 4294901760, %v1404_v46  ;;  %v1640_v46 = vstv %s4012_s25  ;;  %v1686_v62 = vsub.f32 %v1684_v39, %v1685_v26 }
 0x147   : > { %3133 = vmatmul.msk.f32.gmra.mxu1 %vm294_vm0, %v3820_v43  ;;  %1242 = vmatmul.f32.gmra.mxu2 %v3861_v12  ;;  %4410 = vst [vmem:[#allocation29_spill] sm:$0xff] %v3984_v54  ;;  %v1641_v21 = vmul.f32 %v1640_v46, %v3531_v5  ;;  %v1642_v7 = vmul.f32 %v1640_v46, %v3534_v6  ;;  %v4412_v46 = vld [vmem:[#allocation12_spill] sm:$0xff] }
 0x148   : > { %1285 = vmatmul.f32.gmra.mxu3 %v3872_v57  ;;  %4405 = vst [vmem:[#allocation24_spill] sm:$0xff] %v3947_v45  ;;  %v1687_v48 = vand.u32 4294901760, %v1686_v62  ;;  %v1694_v15 = vsub.f32 %v1692_v34, %v1693_v2  ;;  %v4414_v62 = vld [vmem:[#allocation14_spill] sm:$0xff] }
 0x149   : > { %v1647_v32 = vadd.f32 %v1645_v60, %v1641_v21  ;;  %v1648_v60 = vadd.f32 %v1646_v1, %v1642_v7 }
 0x14a   : > { %v1695_v8 = vand.u32 4294901760, %v1694_v15 }
 0x14b   : > { %v1856_v5 = vsel %vm294_vm0, %v1647_v32, 0  ;;  %v1859_v6 = vsel %vm294_vm0, %v1648_v60, 0  ;;  %v3284_v60 = vld [vmem:[%s3504_s9] sm:$0xff] }
 0x14c   : > { %v4057_v21 = vand.u32 4294901760, %v1856_v5  ;;  %v4073_v32 = vand.u32 4294901760, %v1859_v6 }
 0x14e   : > { %3135 = vmatmul.msk.f32.vlgmr.msrb.gmra.mxu0 %vm294_vm0, %v3785_v58 }
 0x14f   : > { %3134 = vmatmul.msk.f32.gmra.mxu1 %vm294_vm0, %v3844_v35  ;;  %3159 = vmatpush.msk.msrb.mxu0 %vm3554_vm2, %v4402_v52 }
 0x150   : > { %1398 = vmatmul.f32.vlgmr.msrb.gmra.mxu2 %v3914_v41  ;;  %3143 = vmatmul.msk.f32.vlgmr.msrb.gmra.mxu3 %vm294_vm0, %v3875_v9 }
 0x151   : > { %1751 = vmatpush.msrb.mxu2 %v3577_v27  ;;  %3161 = vmatpush.msk.msrb.mxu3 %vm3554_vm2, %v4402_v52 }
 0x152   : > { %3160 = vmatpush.msk.msrb.mxu0 %vm3544_vm1, %v4402_v52 }
 0x153   : > { %1754 = vmatpush.msrb.mxu2 %v3558_v19  ;;  %3162 = vmatpush.msk.msrb.mxu3 %vm3544_vm1, %v4402_v52 }
 0x156   : > { %3136 = vmatmul.msk.f32.gmra.mxu0 %vm294_vm0, %v3799_v38 }
 0x157   : > { %3139 = vmatmul.msk.f32.vlgmr.msrb.gmra.mxu1 %vm294_vm0, %v3785_v58 }
 0x158   : > { %1406 = vmatmul.f32.gmra.mxu2 %v3947_v45  ;;  %1719 = vmatpush.msrb.mxu1 %v3630_v51 }
 0x159   : > { %3144 = vmatmul.msk.f32.gmra.mxu3 %vm294_vm0, %v3894_v28 }
 0x15a   : > { %1725 = vmatpush.msrb.mxu1 %v3617_v44 }
 0x15e   : > { %3137 = vmatmul.msk.f32.gmra.mxu0 %vm294_vm0, %v3820_v43 }
 0x15f   : > { %3140 = vmatmul.msk.f32.gmra.mxu1 %vm294_vm0, %v3799_v38 }
 0x160   : > { %1414 = vmatmul.f32.gmra.mxu2 %v3970_v3 }
 0x161   : > { %3145 = vmatmul.msk.f32.gmra.mxu3 %vm294_vm0, %v3912_v47 }
 0x166   : > { %3138 = vmatmul.msk.f32.gmra.mxu0 %vm294_vm0, %v3844_v35 }
 0x167   : > { %3141 = vmatmul.msk.f32.gmra.mxu1 %vm294_vm0, %v3820_v43 }
 0x168   : > { %1422 = vmatmul.f32.gmra.mxu2 %v3984_v54 }
 0x169   : > { %3146 = vmatmul.msk.f32.gmra.mxu3 %vm294_vm0, %v3938_v50 }
 0x16e   : > { %1491 = vmatmul.f32.vlgmr.msra.gmra.mxu0 %v3888_v16 }
 0x16f   : > { %3142 = vmatmul.msk.f32.gmra.mxu1 %vm294_vm0, %v3844_v35  ;;  %1814 = vmatpush.msra.mxu0 %v3601_v36 }
 0x170   : > { %3147 = vmatmul.msk.f32.vlgmr.msra.gmra.mxu2 %vm294_vm0, %v3875_v9 }
 0x171   : > { %3151 = vmatmul.msk.f32.vlgmr.msra.gmra.mxu3 %vm294_vm0, %v3875_v9  ;;  %1818 = vmatpush.msra.mxu0 %v3580_v29 }
 0x172   : > { %3165 = vmatpush.msk.msra.mxu2 %vm3589_vm4, %v4402_v52  ;;  %1915 = vmatpush.msra.mxu3 %v3653_v63 }
 0x174   : > { %3166 = vmatpush.msk.msra.mxu2 %vm3572_vm3, %v4402_v52  ;;  %1921 = vmatpush.msra.mxu3 %v3658_v4 }
 0x176   : > { %1496 = vmatmul.f32.gmra.mxu0 %v3908_v11 }
 0x177   : > { %1531 = vmatmul.f32.vlgmr.msra.gmra.mxu1 %v3897_v42 }
 0x178   : > { %3148 = vmatmul.msk.f32.gmra.mxu2 %vm294_vm0, %v3894_v28  ;;  %3163 = vmatpush.msk.msra.mxu1 %vm3554_vm2, %v4402_v52 }
 0x179   : > { %3152 = vmatmul.msk.f32.gmra.mxu3 %vm294_vm0, %v3894_v28 }
 0x17a   : > { %3164 = vmatpush.msk.msra.mxu1 %vm3544_vm1, %v4402_v52 }
 0x17e   : > { %1501 = vmatmul.f32.gmra.mxu0 %v3932_v40 }
 0x17f   : > { %1537 = vmatmul.f32.gmra.mxu1 %v3917_v49 }
 0x180   : > { %3149 = vmatmul.msk.f32.gmra.mxu2 %vm294_vm0, %v3912_v47 }
 0x181   : > { %3153 = vmatmul.msk.f32.gmra.mxu3 %vm294_vm0, %v3912_v47 }
 0x186   : > { %1506 = vmatmul.f32.gmra.mxu0 %v3964_v13  ;;  %v4062_v13 = vsub.f32 %v1856_v5, %v4057_v21  ;;  %v4086_v5 = vsub.f32 %v1859_v6, %v4073_v32 }
 0x187   : > { %1543 = vmatmul.f32.gmra.mxu1 %v3950_v59  ;;  %v4411_v59 = vld [vmem:[#allocation11_spill] sm:$0xff] }
 0x188   : > { %3150 = vmatmul.msk.f32.gmra.mxu2 %vm294_vm0, %v3938_v50  ;;  %v4360_v1 = vand.u32 4294901760, %v4086_v5 }
 0x189   : > { %3154 = vmatmul.msk.f32.gmra.mxu3 %vm294_vm0, %v3938_v50 }
 0x18e   : > { %1688 = vmatmul.f32.vlgmr.msrb.gmra.mxu0 %v1687_v48  ;;  %v2066_v48 = vstv %s4079_s27 }
 0x18f   : > { %1549 = vmatmul.f32.gmra.mxu1 %v3973_v20  ;;  %1947 = vmatpush.msrb.mxu0 %v4411_v59 }
 0x190   : > { %1757 = vmatmul.f32.vlgmr.msrb.gmra.mxu2 %v1684_v39  ;;  %v4359_v39 = vand.u32 4294901760, %v4062_v13 }
 0x191   : > { %1787 = vmatmul.f32.vlgmr.msrb.gmra.mxu3 %v1685_v26  ;;  %1950 = vmatpush.msrb.mxu0 %v4412_v46 }
 0x192   : > { %2010 = vmatpush.msrb.mxu2 %v4413_v17  ;;  %3169 = vmatpush.msk.msrb.mxu3 %vm3589_vm4, %v4402_v52  ;;  %v1882_v26 = vsub.f32 %v4062_v13, %v4359_v39 }
 0x194   : > { %2014 = vmatpush.msrb.mxu2 %v4414_v62  ;;  %3170 = vmatpush.msk.msrb.mxu3 %vm3572_vm3, %v4402_v52  ;;  %v1883_v7 = vand.u32 4294901760, %v1882_v26 }
 0x196   : > { %1696 = vmatmul.f32.gmra.mxu0 %v1695_v8  ;;  %v1890_v8 = vsub.f32 %v4086_v5, %v4360_v1 }
 0x197   : > { %1727 = vmatmul.f32.vlgmr.msrb.gmra.mxu1 %v4028_v0 }
 0x198   : > { %1762 = vmatmul.f32.gmra.mxu2 %v1692_v34  ;;  %3167 = vmatpush.msk.msrb.mxu1 %vm3589_vm4, %v4402_v52  ;;  %v2062_v34 = vstv %s4070_s15  ;;  %v1891_v39 = vand.u32 4294901760, %v1890_v8 }
 0x199   : > { %1793 = vmatmul.f32.gmra.mxu3 %v1693_v2  ;;  %v2063_v15 = vmul.f32 %v3284_v60, %v2062_v34  ;;  %v3285_v2 = vld [vmem:[%s3504_s9 + $0x10] sm:$0xff] }
 0x19a   : > { %3168 = vmatpush.msk.msrb.mxu1 %vm3572_vm3, %v4402_v52  ;;  %v2067_v6 = vmul.f32 %v3285_v2, %v2066_v48 }
 0x19c   : > { %v2069_v26 = vadd.f32 %v2067_v6, %v2063_v15  ;;  %v3287_v6 = vld [vmem:[%s3504_s9 + $0x18] sm:$0xff] }
 0x19e   : > { %1820 = vmatmul.f32.vlgmr.msra.gmra.mxu0 %v4028_v0 }
 0x19f   : > { %1731 = vmatmul.f32.gmra.mxu1 %v4045_v30  ;;  %3175 = vmatpush.msk.msra.mxu0 %vm3554_vm2, %v4402_v52 }
 0x1a0   : > { %1884 = vmatmul.f32.vlgmr.msra.gmra.mxu2 %v1883_v7  ;;  %v3286_v7 = vld [vmem:[%s3504_s9 + $0x8] sm:$0xff] }
 0x1a1   : > { %1923 = vmatmul.f32.vlgmr.msra.gmra.mxu3 %v4057_v21  ;;  %3176 = vmatpush.msk.msra.mxu0 %vm3544_vm1, %v4402_v52  ;;  %v2064_v15 = vmul.f32 %v3286_v7, %v2062_v34  ;;  %v2056_v34 = vstv %s4122_s29 }
 0x1a2   : > { %2163 = vmatpush.msra.mxu2 %v3577_v27  ;;  %3177 = vmatpush.msk.msra.mxu3 %vm3554_vm2, %v4402_v52  ;;  %v2072_v27 = vsel %vm294_vm0, %v2069_v26, 0  ;;  %v2052_v26 = vstv %s4119_s28 }
 0x1a3   : > { %v4132_v1 = vand.u32 4294901760, %v2072_v27 }
 0x1a4   : > { %2166 = vmatpush.msra.mxu2 %v3558_v19  ;;  %3178 = vmatpush.msk.msra.mxu3 %vm3544_vm1, %v4402_v52  ;;  %v2068_v19 = vmul.f32 %v3287_v6, %v2066_v48 }
 0x1a6   : > { %1824 = vmatmul.f32.gmra.mxu0 %v4045_v30  ;;  %v2070_v20 = vadd.f32 %v2068_v19, %v2064_v15  ;;  %v2058_v19 = vmul.f32 %v3287_v6, %v2056_v34 }
 0x1a7   : > { %1847 = vmatmul.f32.vlgmr.msra.gmra.mxu1 %v4028_v0  ;;  %v2096_v0 = vsub.f32 %v2072_v27, %v4132_v1 }
 0x1a8   : > { %1892 = vmatmul.f32.gmra.mxu2 %v1891_v39  ;;  %2131 = vmatpush.msra.mxu1 %v3630_v51  ;;  %v2075_v39 = vsel %vm294_vm0, %v2070_v20, 0  ;;  %v2057_v51 = vmul.f32 %v3285_v2, %v2056_v34  ;;  %v4415_v2 = vand.u32 4294901760, %v4062_v13 }
 0x1a9   : > { %1927 = vmatmul.f32.gmra.mxu3 %v4073_v32  ;;  %v2097_v48 = vand.u32 4294901760, %v2096_v0  ;;  %v4145_v15 = vand.u32 4294901760, %v2075_v39 }
 0x1aa   : > { %v4130_v8 = vpop.f32.mrf.mxu0  ;;  %2137 = vmatpush.msra.mxu1 %v3617_v44  ;;  %v2053_v44 = vmul.f32 %v3284_v60, %v2052_v26 }
 0x1ab   : > { %v2098_v60 = vsub.f32 %v2096_v0, %v2097_v48 }
 0x1ae   : > { %1953 = vmatmul.f32.vlgmr.msrb.gmra.mxu0 %v4062_v13 }
 0x1af   : > { %1851 = vmatmul.f32.gmra.mxu1 %v4045_v30  ;;  %2226 = vmatpush.msrb.mxu0 %v3601_v36 }
 0x1b0   : > { %2016 = vmatmul.f32.vlgmr.msrb.gmra.mxu2 %v4057_v21 }
 0x1b1   : > { %2043 = vmatmul.f32.vlgmr.msrb.gmra.mxu3 %v4057_v21  ;;  %2230 = vmatpush.msrb.mxu0 %v3580_v29  ;;  %v2059_v29 = vadd.f32 %v2057_v51, %v2053_v44  ;;  %v2099_v44 = vand.u32 4294901760, %v2098_v60 }
 0x1b2   : > { %3181 = vmatpush.msk.msrb.mxu2 %vm3589_vm4, %v4402_v52  ;;  %2327 = vmatpush.msrb.mxu3 %v3653_v63  ;;  %v4153_v36 = vpop.f32.mrf.mxu2  ;;  %v2104_v63 = vsub.f32 %v2075_v39, %v4145_v15 }
 0x1b3   : > { %v4151_v20 = vpop.f32.mrf.mxu0  ;;  %v4157_v21 = vpop.f32.mrf.mxu3  ;;  %v2268_v27 = vsel %vm294_vm0, %v2059_v29, 0 }
 0x1b4   : > { %v4155_v30 = vpop.f32.mrf.mxu1  ;;  %3182 = vmatpush.msk.msrb.mxu2 %vm3572_vm3, %v4402_v52  ;;  %2333 = vmatpush.msrb.mxu3 %v3658_v4  ;;  %v2054_v4 = vmul.f32 %v3286_v7, %v2052_v26  ;;  %v2105_v51 = vand.u32 4294901760, %v2104_v63  ;;  %v2291_v49 = vand.u32 4294901760, %v2268_v27  ;;  %v4416_v7 = vand.u32 4294901760, %v4086_v5 }
 0x1b6   : > { %1958 = vmatmul.f32.gmra.mxu0 %v4086_v5  ;;  %v2106_v29 = vsub.f32 %v2104_v63, %v2105_v51  ;;  %v2292_v10 = vsub.f32 %v2268_v27, %v2291_v49 }
 0x1b7   : > { %1983 = vmatmul.f32.vlgmr.msrb.gmra.mxu1 %v4415_v2 }
 0x1b8   : > { %2020 = vmatmul.f32.gmra.mxu2 %v4073_v32  ;;  %3179 = vmatpush.msk.msrb.mxu1 %vm3554_vm2, %v4402_v52  ;;  %v2107_v26 = vand.u32 4294901760, %v2106_v29 }
 0x1b9   : > { %2047 = vmatmul.f32.gmra.mxu3 %v4073_v32  ;;  %v2060_v32 = vadd.f32 %v2058_v19, %v2054_v4 }
 0x1ba   : > { %3180 = vmatpush.msk.msrb.mxu1 %vm3544_vm1, %v4402_v52  ;;  %v4178_v39 = vpop.f32.mrf.mxu2 }
 0x1bb   : > { %v4176_v13 = vpop.f32.mrf.mxu0  ;;  %v4182_v18 = vpop.f32.mrf.mxu3  ;;  %v2271_v6 = vsel %vm294_vm0, %v2060_v32, 0 }
 0x1bc   : > { %v4180_v2 = vpop.f32.mrf.mxu1 }
 0x1bd   : > { %v1195_v16 = vadd.f32 %v4180_v2, %v4151_v20 }
 0x1be   : > { %2100 = vmatmul.f32.vlgmr.msra.gmra.mxu0 %v2099_v44 }
 0x1bf   : > { %1989 = vmatmul.f32.gmra.mxu1 %v4416_v7  ;;  %2359 = vmatpush.msra.mxu0 %v4411_v59 }
 0x1c0   : > { %2169 = vmatmul.f32.vlgmr.msra.gmra.mxu2 %v2096_v0  ;;  %v2293_v0 = vand.u32 4294901760, %v2292_v10 }
 0x1c1   : > { %2199 = vmatmul.f32.vlgmr.msra.gmra.mxu3 %v2097_v48  ;;  %2362 = vmatpush.msra.mxu0 %v4412_v46  ;;  %v2299_v48 = vand.u32 4294901760, %v2271_v6 }
 0x1c2   : > { %2422 = vmatpush.msra.mxu2 %v4413_v17  ;;  %3185 = vmatpush.msk.msra.mxu3 %vm3589_vm4, %v4402_v52  ;;  %v4195_v5 = vpop.f32.mrf.mxu2  ;;  %v2294_v46 = vsub.f32 %v2292_v10, %v2293_v0 }
 0x1c3   : > { %v4193_v34 = vpop.f32.mrf.mxu0  ;;  %v4197_v59 = vpop.f32.mrf.mxu3  ;;  %v2300_v17 = vsub.f32 %v2271_v6, %v2299_v48 }
 0x1c4   : > { %v1198_v60 = vpop.f32.mrf.mxu1  ;;  %2426 = vmatpush.msra.mxu2 %v4414_v62  ;;  %3186 = vmatpush.msk.msra.mxu3 %vm3572_vm3, %v4402_v52  ;;  %v2295_v44 = vand.u32 4294901760, %v2294_v46 }
 0x1c5   : > { %v2301_v32 = vand.u32 4294901760, %v2300_v17 }
 0x1c6   : > { %2108 = vmatmul.f32.gmra.mxu0 %v2107_v26 }
 0x1c7   : > { %2139 = vmatmul.f32.vlgmr.msra.gmra.mxu1 %v4132_v1  ;;  %v2302_v31 = vsub.f32 %v2300_v17, %v2301_v32 }
 0x1c8   : > { %2174 = vmatmul.f32.gmra.mxu2 %v2104_v63  ;;  %3183 = vmatpush.msk.msra.mxu1 %vm3589_vm4, %v4402_v52 }
 0x1c9   : > { %2205 = vmatmul.f32.gmra.mxu3 %v2105_v51 }
 0x1ca   : > { %3184 = vmatpush.msk.msra.mxu1 %vm3572_vm3, %v4402_v52  ;;  %v4210_v27 = vpop.f32.mrf.mxu2  ;;  %v2303_v52 = vand.u32 4294901760, %v2302_v31 }
 0x1cb   : > { %v1313_v62 = vpop.f32.mrf.mxu0  ;;  %v4212_v19 = vpop.f32.mrf.mxu3 }
 0x1cc   : > { %v1202_v4 = vpop.f32.mrf.mxu1 }
 0x1ce   : > { %2232 = vmatmul.f32.vlgmr.msrb.gmra.mxu0 %v4132_v1 }
 0x1cf   : > { %2143 = vmatmul.f32.gmra.mxu1 %v4145_v15 }
 0x1d0   : > { %2296 = vmatmul.f32.vlgmr.msrb.gmra.mxu2 %v2295_v44  ;;  %v1191_v44 = vadd.f32 %v4155_v30, %v4130_v8  ;;  %v1234_v8 = vadd.f32 %v4178_v39, %v1195_v16 }
 0x1d1   : > { %2335 = vmatmul.f32.vlgmr.msrb.gmra.mxu3 %v2291_v49 }
 0x1d2   : > { %v1229_v40 = vadd.f32 %v4153_v36, %v1191_v44  ;;  %v1275_v44 = vadd.f32 %v4182_v18, %v1234_v8  ;;  %v1203_v18 = vadd.f32 %v1202_v4, %v4193_v34 }
 0x1d3   : > { %v1317_v63 = vpop.f32.mrf.mxu0  ;;  %v1399_v51 = vpop.f32.mrf.mxu2 }
 0x1d4   : > { %v1348_v29 = vpop.f32.mrf.mxu1  ;;  %v1454_v25 = vpop.f32.mrf.mxu3  ;;  %v1318_v20 = vadd.f32 %v1317_v63, %v1275_v44 }
 0x1d6   : > { %2236 = vmatmul.f32.gmra.mxu0 %v4145_v15 }
 0x1d7   : > { %2259 = vmatmul.f32.vlgmr.msrb.gmra.mxu1 %v4132_v1 }
 0x1d8   : > { %2304 = vmatmul.f32.gmra.mxu2 %v2303_v52  ;;  %v1269_v52 = vadd.f32 %v4157_v21, %v1229_v40  ;;  %v1199_v40 = vadd.f32 %v1198_v60, %v4176_v13 }
 0x1d9   : > { %2339 = vmatmul.f32.gmra.mxu3 %v2299_v48 }
 0x1da   : > { %v1314_v50 = vadd.f32 %v1313_v62, %v1269_v52  ;;  %v1239_v2 = vadd.f32 %v4195_v5, %v1199_v40  ;;  %v1244_v5 = vadd.f32 %v4210_v27, %v1203_v18 }
 0x1db   : > { %v1321_v7 = vpop.f32.mrf.mxu0  ;;  %v1407_v6 = vpop.f32.mrf.mxu2 }
 0x1dc   : > { %v1352_v26 = vpop.f32.mrf.mxu1  ;;  %v1458_v46 = vpop.f32.mrf.mxu3 }
 0x1dd   : > { %v1353_v16 = vadd.f32 %v1352_v26, %v1318_v20 }
 0x1de   : > { %2365 = vmatmul.f32.vlgmr.msra.gmra.mxu0 %v2292_v10 }
 0x1df   : > { %2263 = vmatmul.f32.gmra.mxu1 %v4145_v15  ;;  %v1349_v15 = vadd.f32 %v1348_v29, %v1314_v50  ;;  %v1281_v29 = vadd.f32 %v4197_v59, %v1239_v2  ;;  %v1408_v13 = vadd.f32 %v1407_v6, %v1353_v16 }
 0x1e0   : > { %2428 = vmatmul.f32.vlgmr.msra.gmra.mxu2 %v2291_v49 }
 0x1e1   : > { %2455 = vmatmul.f32.vlgmr.msra.gmra.mxu3 %v2291_v49  ;;  %v1400_v21 = vadd.f32 %v1399_v51, %v1349_v15  ;;  %v1322_v63 = vadd.f32 %v1321_v7, %v1281_v29  ;;  %v1628_v51 = vstv %s1627_s4  ;;  %v1287_v15 = vadd.f32 %v4212_v19, %v1244_v5 }
 0x1e3   : > { %v1325_v31 = vpop.f32.mrf.mxu0  ;;  %v1415_v42 = vpop.f32.mrf.mxu2 }
 0x1e4   : > { %v1356_v11 = vpop.f32.mrf.mxu1  ;;  %v1462_v1 = vpop.f32.mrf.mxu3 }
 0x1e5   : > { %v1357_v26 = vadd.f32 %v1356_v11, %v1322_v63 }
 0x1e6   : > { %2370 = vmatmul.f32.gmra.mxu0 %v2300_v17 }
 0x1e7   : > { %2395 = vmatmul.f32.vlgmr.msra.gmra.mxu1 %v2293_v0  ;;  %v1455_v0 = vadd.f32 %v1454_v25, %v1400_v21  ;;  %v1459_v25 = vadd.f32 %v1458_v46, %v1408_v13  ;;  %v1416_v27 = vadd.f32 %v1415_v42, %v1357_v26  ;;  %v1326_v46 = vadd.f32 %v1325_v31, %v1287_v15 }
 0x1e8   : > { %2432 = vmatmul.f32.gmra.mxu2 %v2299_v48 }
 0x1e9   : > { %2459 = vmatmul.f32.gmra.mxu3 %v2299_v48  ;;  %v1463_v44 = vadd.f32 %v1462_v1, %v1416_v27 }
 0x1eb   : > { %v1492_v36 = vpop.f32.mrf.mxu0  ;;  %v1423_v49 = vpop.f32.mrf.mxu2 }
 0x1ec   : > { %v1360_v30 = vpop.f32.mrf.mxu1  ;;  %v1466_v10 = vpop.f32.mrf.mxu3  ;;  %v1493_v50 = vadd.f32 %v1492_v36, %v1455_v0 }
 0x1ed   : > { %v1361_v40 = vadd.f32 %v1360_v30, %v1326_v46 }
 0x1ef   : > { %2401 = vmatmul.f32.gmra.mxu1 %v2301_v32 }
 0x1f3   : > { %v1497_v39 = vpop.f32.mrf.mxu0  ;;  %v1577_v48 = vpop.f32.mrf.mxu2 }
 0x1f4   : > { %v1532_v17 = vpop.f32.mrf.mxu1  ;;  %v1612_v62 = vpop.f32.mrf.mxu3  ;;  %v1498_v59 = vadd.f32 %v1497_v39, %v1459_v25 }
 0x1f5   : > { %v1533_v60 = vadd.f32 %v1532_v17, %v1493_v50 }
 0x1f7   : > { %v1578_v32 = vadd.f32 %v1577_v48, %v1533_v60  ;;  %v1424_v48 = vadd.f32 %v1423_v49, %v1361_v40 }
 0x1f9   : > { %v1613_v52 = vadd.f32 %v1612_v62, %v1578_v32  ;;  %v1467_v17 = vadd.f32 %v1466_v10, %v1424_v48 }
 0x1fb   : > { %v1629_v34 = vadd.f32 %v1628_v51, %v1613_v52  ;;  %v1502_v4 = vpop.f32.mrf.mxu0  ;;  %v1581_v6 = vpop.f32.mrf.mxu2 }
 0x1fc   : > { %v1538_v7 = vpop.f32.mrf.mxu1  ;;  %v1616_v8 = vpop.f32.mrf.mxu3  ;;  %v1503_v20 = vadd.f32 %v1502_v4, %v1463_v44 }
 0x1fd   : > { %1634 = vst.msk [vmem:[%s4237_s8] sm:$0xff] %vm1633_vm13, %v1629_v34  ;;  %v1539_v11 = vadd.f32 %v1538_v7, %v1498_v59 }
 0x1ff   : > { %v1582_v36 = vadd.f32 %v1581_v6, %v1539_v11 }
 0x201   : > { %v1617_v21 = vadd.f32 %v1616_v8, %v1582_v36 }
 0x203   : > { %v1630_v2 = vadd.f32 %v1628_v51, %v1617_v21  ;;  %v1507_v0 = vpop.f32.mrf.mxu0  ;;  %v1585_v16 = vpop.f32.mrf.mxu2 }
 0x204   : > { %v1544_v50 = vpop.f32.mrf.mxu1  ;;  %v1620_v39 = vpop.f32.mrf.mxu3  ;;  %v1508_v29 = vadd.f32 %v1507_v0, %v1467_v17 }
 0x205   : > { %1635 = vst.msk [vmem:[%s4237_s8 + $0x8] sm:$0xff] %vm1633_vm13, %v1630_v2  ;;  %v1545_v19 = vadd.f32 %v1544_v50, %v1503_v20 }
 0x207   : > { %v1586_v42 = vadd.f32 %v1585_v16, %v1545_v19 }
 0x209   : > { %v1621_v62 = vadd.f32 %v1620_v39, %v1586_v42 }
 0x20b   : > { %v1631_v31 = vadd.f32 %v1628_v51, %v1621_v62  ;;  %v1689_v1 = vpop.f32.mrf.mxu0  ;;  %v1589_v30 = vpop.f32.mrf.mxu2 }
 0x20c   : > { %v1550_v18 = vpop.f32.mrf.mxu1  ;;  %v1624_v13 = vpop.f32.mrf.mxu3 }
 0x20d   : > { %1636 = vst.msk [vmem:[%s4237_s8 + $0x10] sm:$0xff] %vm1633_vm13, %v1631_v31  ;;  %v1551_v60 = vadd.f32 %v1550_v18, %v1508_v29 }
 0x20f   : > { %v1590_v63 = vadd.f32 %v1589_v30, %v1551_v60 }
 0x211   : > { %v1625_v32 = vadd.f32 %v1624_v13, %v1590_v63 }
 0x213   : > { %v1632_v49 = vadd.f32 %v1628_v51, %v1625_v32  ;;  %v1697_v5 = vpop.f32.mrf.mxu0  ;;  %v1758_v25 = vpop.f32.mrf.mxu2 }
 0x214   : > { %v1728_v26 = vpop.f32.mrf.mxu1  ;;  %v1788_v52 = vpop.f32.mrf.mxu3 }
 0x215   : > { %1638 = vst.msk [vmem:[%s4237_s8 + $0x18] sm:$0x7f] %vm1637_vm14, %v1632_v49  ;;  %v1729_v10 = vadd.f32 %v1728_v26, %v1689_v1 }
 0x217   : > { %v1759_v59 = vadd.f32 %v1758_v25, %v1729_v10 }
 0x219   : > { %v1789_v34 = vadd.f32 %v1788_v52, %v1759_v59 }
 0x21b   : > { %v1821_v4 = vpop.f32.mrf.mxu0  ;;  %v1763_v6 = vpop.f32.mrf.mxu2 }
 0x21c   : > { %v1732_v7 = vpop.f32.mrf.mxu1  ;;  %v1794_v8 = vpop.f32.mrf.mxu3  ;;  %v1822_v49 = vadd.f32 %v1821_v4, %v1789_v34 }
 0x21d   : > { %v1733_v19 = vadd.f32 %v1732_v7, %v1697_v5 }
 0x21f   : > { %v1764_v31 = vadd.f32 %v1763_v6, %v1733_v19 }
 0x221   : > { %v1795_v1 = vadd.f32 %v1794_v8, %v1764_v31 }
 0x223   : > { %v1825_v15 = vpop.f32.mrf.mxu0  ;;  %v1885_v27 = vpop.f32.mrf.mxu2 }
 0x224   : > { %v1848_v11 = vpop.f32.mrf.mxu1  ;;  %v1924_v46 = vpop.f32.mrf.mxu3  ;;  %v1826_v63 = vadd.f32 %v1825_v15, %v1795_v1 }
 0x225   : > { %v1849_v26 = vadd.f32 %v1848_v11, %v1822_v49 }
 0x227   : > { %v1886_v47 = vadd.f32 %v1885_v27, %v1849_v26 }
 0x229   : > { %v1925_v19 = vadd.f32 %v1924_v46, %v1886_v47 }
 0x22b   : > { %v1954_v36 = vpop.f32.mrf.mxu0  ;;  %v1893_v44 = vpop.f32.mrf.mxu2 }
 0x22c   : > { %v1852_v51 = vpop.f32.mrf.mxu1  ;;  %v1928_v40 = vpop.f32.mrf.mxu3  ;;  %v1955_v15 = vadd.f32 %v1954_v36, %v1925_v19 }
 0x22d   : > { %v1853_v25 = vadd.f32 %v1852_v51, %v1826_v63 }
 0x22f   : > { %v1894_v10 = vadd.f32 %v1893_v44, %v1853_v25 }
 0x231   : > { %v1929_v6 = vadd.f32 %v1928_v40, %v1894_v10 }
 0x233   : > { %v1959_v21 = vpop.f32.mrf.mxu0  ;;  %v2017_v20 = vpop.f32.mrf.mxu2 }
 0x234   : > { %v1984_v2 = vpop.f32.mrf.mxu1  ;;  %v2044_v0 = vpop.f32.mrf.mxu3  ;;  %v1960_v31 = vadd.f32 %v1959_v21, %v1929_v6 }
 0x235   : > { %v1985_v51 = vadd.f32 %v1984_v2, %v1955_v15 }
 0x237   : > { %v2018_v27 = vadd.f32 %v2017_v20, %v1985_v51 }
 0x239   : > { %v2045_v21 = vadd.f32 %v2044_v0, %v2018_v27 }
 0x23b   : > { %v2101_v16 = vpop.f32.mrf.mxu0  ;;  %v2021_v50 = vpop.f32.mrf.mxu2  ;;  %v2731_v2 = vand.u32 4294901760, %v2045_v21 }
 0x23c   : > { %v1990_v39 = vpop.f32.mrf.mxu1  ;;  %v2048_v48 = vpop.f32.mrf.mxu3 }
 0x243   : > { %v2109_v42 = vpop.f32.mrf.mxu0  ;;  %v2170_v17 = vpop.f32.mrf.mxu2 }
 0x244   : > { %v2140_v62 = vpop.f32.mrf.mxu1  ;;  %v2200_v29 = vpop.f32.mrf.mxu3 }
 0x245   : > { %v2141_v32 = vadd.f32 %v2140_v62, %v2101_v16  ;;  %v1991_v16 = vadd.f32 %v1990_v39, %v1960_v31 }
 0x247   : > { %v2171_v52 = vadd.f32 %v2170_v17, %v2141_v32  ;;  %v2022_v1 = vadd.f32 %v2021_v50, %v1991_v16  ;;  %v2787_v32 = vsub.f32 %v2045_v21, %v2731_v2 }
 0x249   : > { %v2201_v3 = vadd.f32 %v2200_v29, %v2171_v52  ;;  %v2049_v40 = vadd.f32 %v2048_v48, %v2022_v1  ;;  %v2788_v0 = vand.u32 4294901760, %v2787_v32 }
 0x24b   : > { %v2233_v30 = vpop.f32.mrf.mxu0  ;;  %v2175_v18 = vpop.f32.mrf.mxu2 }
 0x24c   : > { %v2144_v13 = vpop.f32.mrf.mxu1  ;;  %v2206_v60 = vpop.f32.mrf.mxu3  ;;  %v2234_v8 = vadd.f32 %v2233_v30, %v2201_v3  ;;  %v2729_v30 = vand.u32 4294901760, %v2049_v40 }
 0x24d   : > { %v2145_v28 = vadd.f32 %v2144_v13, %v2109_v42 }
 0x24f   : > { %v2176_v45 = vadd.f32 %v2175_v18, %v2145_v28 }
 0x251   : > { %v2207_v44 = vadd.f32 %v2206_v60, %v2176_v45 }
 0x253   : > { %v2237_v59 = vpop.f32.mrf.mxu0  ;;  %v2297_v54 = vpop.f32.mrf.mxu2 }
 0x254   : > { %v2260_v5 = vpop.f32.mrf.mxu1  ;;  %v2336_v7 = vpop.f32.mrf.mxu3  ;;  %v2238_v63 = vadd.f32 %v2237_v59, %v2207_v44 }
 0x255   : > { %v2261_v9 = vadd.f32 %v2260_v5, %v2234_v8  ;;  %v2789_v8 = vsub.f32 %v2787_v32, %v2788_v0 }
 0x257   : > { %v2298_v17 = vadd.f32 %v2297_v54, %v2261_v9  ;;  %v2781_v54 = vsub.f32 %v2049_v40, %v2729_v30 }
 0x259   : > { %v2337_v29 = vadd.f32 %v2336_v7, %v2298_v17  ;;  %v2782_v26 = vand.u32 4294901760, %v2781_v54 }
 0x25b   : > { %v2305_v34 = vpop.f32.mrf.mxu2  ;;  %v2366_v62 = vpop.f32.mrf.mxu0  ;;  %v2783_v5 = vsub.f32 %v2781_v54, %v2782_v26 }
 0x25c   : > { %v2264_v4 = vpop.f32.mrf.mxu1  ;;  %v2340_v11 = vpop.f32.mrf.mxu3  ;;  %v2367_v3 = vadd.f32 %v2366_v62, %v2337_v29 }
 0x25d   : > { %v2265_v42 = vadd.f32 %v2264_v4, %v2238_v63  ;;  %v2784_v15 = vand.u32 4294901760, %v2783_v5 }
 0x25f   : > { %v2306_v36 = vadd.f32 %v2305_v34, %v2265_v42  ;;  %v2790_v34 = vand.u32 4294901760, %v2789_v8 }
 0x261   : > { %v2341_v45 = vadd.f32 %v2340_v11, %v2306_v36 }
 0x263   : > { %v2429_v47 = vpop.f32.mrf.mxu2  ;;  %v2371_v13 = vpop.f32.mrf.mxu0 }
 0x264   : > { %v2396_v46 = vpop.f32.mrf.mxu1  ;;  %v2456_v28 = vpop.f32.mrf.mxu3  ;;  %v2372_v50 = vadd.f32 %v2371_v13, %v2341_v45 }
 0x265   : > { %v2397_v39 = vadd.f32 %v2396_v46, %v2367_v3 }
 0x267   : > { %v2430_v18 = vadd.f32 %v2429_v47, %v2397_v39 }
 0x269   : > { %v2457_v9 = vadd.f32 %v2456_v28, %v2430_v18 }
 0x26b   : > { %v2433_v20 = vpop.f32.mrf.mxu2  ;;  %v2479_v48 = vand.u32 4294901760, %v2457_v9 }
 0x26c   : > { %v2402_v60 = vpop.f32.mrf.mxu1  ;;  %v2460_v25 = vpop.f32.mrf.mxu3 }
 0x26d   : > { %v2403_v49 = vadd.f32 %v2402_v60, %v2372_v50  ;;  %v2535_v59 = vsub.f32 %v2457_v9, %v2479_v48 }
 0x26f   : > { %v2434_v52 = vadd.f32 %v2433_v20, %v2403_v49  ;;  %v2536_v19 = vand.u32 4294901760, %v2535_v59 }
 0x271   : > { %v2461_v10 = vadd.f32 %v2460_v25, %v2434_v52  ;;  %v2537_v4 = vsub.f32 %v2535_v59, %v2536_v19 }
 0x273   : > { %v2477_v7 = vand.u32 4294901760, %v2461_v10  ;;  %v2538_v51 = vand.u32 4294901760, %v2537_v4 }
 0x275   : > { %v2529_v6 = vsub.f32 %v2461_v10, %v2477_v7  ;;  %2478 = vmatpush.msrb.mxu0 %v2477_v7  ;;  %2613 = vmatpush.msrb.mxu3 %v2477_v7 }
 0x277   : > { %v2530_v31 = vand.u32 4294901760, %v2529_v6  ;;  %2480 = vmatpush.msrb.mxu0 %v2479_v48  ;;  %2573 = vmatpush.msrb.mxu2 %v2529_v6 }
 0x278   : > { %2615 = vmatpush.msrb.mxu3 %v2479_v48  ;;  %2486 = vmatmul.f32.vlgmr.msrb.gmra.mxu0 %v3822_v14  ;;  %v4420_v14 = vld [vmem:[#allocation27_spill] sm:$0xff] }
 0x279   : > { %v2531_v16 = vsub.f32 %v2529_v6, %v2530_v31  ;;  %2576 = vmatpush.msrb.mxu2 %v2535_v59  ;;  %2658 = vmatpush.msra.mxu0 %v2530_v31 }
 0x27a   : > { %2785 = vmatpush.msra.mxu3 %v2784_v15  ;;  %2579 = vmatmul.f32.vlgmr.msrb.gmra.mxu2 %v3791_v56  ;;  %v4417_v56 = vld [vmem:[#allocation15_spill] sm:$0xff] }
 0x27b   : > { %2730 = vmatpush.msra.mxu2 %v2729_v30  ;;  %v2532_v11 = vand.u32 4294901760, %v2531_v16  ;;  %2619 = vmatmul.f32.vlgmr.msrb.gmra.mxu3 %v3802_v33  ;;  %v4418_v33 = vld [vmem:[#allocation24_spill] sm:$0xff] }
 0x27c   : > { %2791 = vmatpush.msra.mxu3 %v2790_v34  ;;  %2662 = vmatpush.msra.mxu0 %v2536_v19 }
 0x27d   : > { %2732 = vmatpush.msra.mxu2 %v2731_v2  ;;  %2533 = vmatpush.msrb.mxu1 %v2532_v11 }
 0x27e   : > { %2947 = vmatpush.msrb.mxu3 %v2729_v30  ;;  %2825 = vmatpush.msrb.mxu0 %v2781_v54 }
 0x27f   : > { %2910 = vmatpush.msrb.mxu2 %v2782_v26  ;;  %2539 = vmatpush.msrb.mxu1 %v2538_v51 }
 0x280   : > { %2949 = vmatpush.msrb.mxu3 %v2731_v2  ;;  %2828 = vmatpush.msrb.mxu0 %v2787_v32 }
 0x281   : > { %2914 = vmatpush.msrb.mxu2 %v2788_v0  ;;  %2494 = vmatmul.f32.gmra.mxu0 %v3849_v61  ;;  %v4424_v61 = vld [vmem:[#allocation16_spill] sm:$0xff] }
 0x282   : > { %3187 = vmatmul.msk.f32.vlgmr.msrb.gmra.mxu1 %vm294_vm0, %v3785_v58  ;;  %2584 = vmatmul.f32.gmra.mxu2 %v3816_v23  ;;  %v4419_v23 = vld [vmem:[#allocation17_spill] sm:$0xff] }
 0x283   : > { %2695 = vmatpush.msra.mxu1 %v2477_v7  ;;  %2625 = vmatmul.f32.gmra.mxu3 %v3828_v55  ;;  %v4421_v55 = vld [vmem:[#allocation20_spill] sm:$0xff] }
 0x285   : > { %2697 = vmatpush.msra.mxu1 %v2479_v48 }
 0x287   : > { %2865 = vmatpush.msrb.mxu1 %v2729_v30 }
 0x289   : > { %2867 = vmatpush.msrb.mxu1 %v2731_v2  ;;  %2502 = vmatmul.f32.gmra.mxu0 %v3869_v53  ;;  %v4430_v53 = vld [vmem:[#allocation25_spill] sm:$0xff] }
 0x28a   : > { %3188 = vmatmul.msk.f32.gmra.mxu1 %vm294_vm0, %v3799_v38  ;;  %2589 = vmatmul.f32.gmra.mxu2 %v3839_v22  ;;  %v4423_v22 = vld [vmem:[#allocation23_spill] sm:$0xff] }
 0x28b   : > { %2631 = vmatmul.f32.gmra.mxu3 %v3852_v37  ;;  %v4426_v37 = vld [vmem:[#allocation18_spill] sm:$0xff] }
 0x291   : > { %2510 = vmatmul.f32.gmra.mxu0 %v3891_v24 }
 0x292   : > { %3189 = vmatmul.msk.f32.gmra.mxu1 %vm294_vm0, %v3820_v43  ;;  %2594 = vmatmul.f32.gmra.mxu2 %v3861_v12  ;;  %v4428_v12 = vld [vmem:[#allocation21_spill] sm:$0xff] }
 0x293   : > { %2637 = vmatmul.f32.gmra.mxu3 %v3872_v57  ;;  %v4431_v57 = vld [vmem:[#allocation28_spill] sm:$0xff] }
 0x299   : > { %3191 = vmatmul.msk.f32.vlgmr.msra.gmra.mxu0 %vm294_vm0, %v3785_v58 }
 0x29a   : > { %3190 = vmatmul.msk.f32.gmra.mxu1 %vm294_vm0, %v3844_v35  ;;  %2738 = vmatmul.f32.vlgmr.msra.gmra.mxu2 %v3914_v41 }
 0x29b   : > { %3199 = vmatmul.msk.f32.vlgmr.msra.gmra.mxu3 %vm294_vm0, %v4417_v56 }
 0x2a1   : > { %3192 = vmatmul.msk.f32.gmra.mxu0 %vm294_vm0, %v3799_v38 }
 0x2a2   : > { %3195 = vmatmul.msk.f32.vlgmr.msra.gmra.mxu1 %vm294_vm0, %v3785_v58  ;;  %2746 = vmatmul.f32.gmra.mxu2 %v4418_v33  ;;  %v4422_v58 = vld [vmem:[#allocation29_spill] sm:$0xff] }
 0x2a3   : > { %3200 = vmatmul.msk.f32.gmra.mxu3 %vm294_vm0, %v4419_v23 }
 0x2a9   : > { %3193 = vmatmul.msk.f32.gmra.mxu0 %vm294_vm0, %v3820_v43 }
 0x2aa   : > { %3196 = vmatmul.msk.f32.gmra.mxu1 %vm294_vm0, %v3799_v38  ;;  %2754 = vmatmul.f32.gmra.mxu2 %v4420_v14  ;;  %v4425_v38 = vld [vmem:[#allocation19_spill] sm:$0xff] }
 0x2ab   : > { %3201 = vmatmul.msk.f32.gmra.mxu3 %vm294_vm0, %v4421_v55 }
 0x2b1   : > { %3194 = vmatmul.msk.f32.gmra.mxu0 %vm294_vm0, %v3844_v35 }
 0x2b2   : > { %3197 = vmatmul.msk.f32.gmra.mxu1 %vm294_vm0, %v3820_v43  ;;  %2762 = vmatmul.f32.gmra.mxu2 %v4422_v58  ;;  %v4427_v43 = vld [vmem:[#allocation22_spill] sm:$0xff] }
 0x2b3   : > { %3202 = vmatmul.msk.f32.gmra.mxu3 %vm294_vm0, %v4423_v22 }
 0x2b9   : > { %2831 = vmatmul.f32.vlgmr.msrb.gmra.mxu0 %v4424_v61 }
 0x2ba   : > { %3198 = vmatmul.msk.f32.gmra.mxu1 %vm294_vm0, %v3844_v35  ;;  %3203 = vmatmul.msk.f32.vlgmr.msrb.gmra.mxu2 %vm294_vm0, %v4417_v56  ;;  %v4429_v35 = vld [vmem:[#allocation26_spill] sm:$0xff] }
 0x2bb   : > { %3207 = vmatmul.msk.f32.vlgmr.msrb.gmra.mxu3 %vm294_vm0, %v4417_v56 }
 0x2c1   : > { %2836 = vmatmul.f32.gmra.mxu0 %v4425_v38 }
 0x2c2   : > { %2871 = vmatmul.f32.vlgmr.msrb.gmra.mxu1 %v4426_v37  ;;  %3204 = vmatmul.msk.f32.gmra.mxu2 %vm294_vm0, %v4419_v23  ;;  %v2968_v37 = vstv %s3211_s16 }
 0x2c3   : > { %3208 = vmatmul.msk.f32.gmra.mxu3 %vm294_vm0, %v4419_v23 }
 0x2c9   : > { %2841 = vmatmul.f32.gmra.mxu0 %v4427_v43 }
 0x2ca   : > { %2877 = vmatmul.f32.gmra.mxu1 %v4428_v12  ;;  %3205 = vmatmul.msk.f32.gmra.mxu2 %vm294_vm0, %v4421_v55 }
 0x2cb   : > { %3209 = vmatmul.msk.f32.gmra.mxu3 %vm294_vm0, %v4421_v55 }
 0x2d1   : > { %2846 = vmatmul.f32.gmra.mxu0 %v4429_v35 }
 0x2d2   : > { %2883 = vmatmul.f32.gmra.mxu1 %v4430_v53  ;;  %3206 = vmatmul.msk.f32.gmra.mxu2 %vm294_vm0, %v4423_v22 }
 0x2d3   : > { %3210 = vmatmul.msk.f32.gmra.mxu3 %vm294_vm0, %v4423_v22 }
 0x2da   : > { %2889 = vmatmul.f32.gmra.mxu1 %v4431_v57 }
 0x2f5   : > { %v2487_v24 = vpop.f32.mrf.mxu0 }
 0x2fd   : > { %v2580_v44 = vpop.f32.mrf.mxu2 }
 0x2fe   : > { %v2495_v41 = vpop.f32.mrf.mxu0  ;;  %v2620_v62 = vpop.f32.mrf.mxu3 }
 0x2ff   : > { %v2542_v17 = vpop.f32.mrf.mxu1 }
 0x300   : > { %v2543_v50 = vadd.f32 %v2542_v17, %v2487_v24 }
 0x302   : > { %v2581_v60 = vadd.f32 %v2580_v44, %v2543_v50 }
 0x304   : > { %v2621_v25 = vadd.f32 %v2620_v62, %v2581_v60 }
 0x305   : > { %v2585_v63 = vpop.f32.mrf.mxu2 }
 0x306   : > { %v2503_v1 = vpop.f32.mrf.mxu0  ;;  %v2626_v29 = vpop.f32.mrf.mxu3 }
 0x307   : > { %v2546_v27 = vpop.f32.mrf.mxu1 }
 0x308   : > { %v2547_v26 = vadd.f32 %v2546_v27, %v2495_v41 }
 0x30a   : > { %v2586_v10 = vadd.f32 %v2585_v63, %v2547_v26 }
 0x30c   : > { %v2627_v8 = vadd.f32 %v2626_v29, %v2586_v10 }
 0x30d   : > { %v2590_v40 = vpop.f32.mrf.mxu2 }
 0x30e   : > { %v2511_v42 = vpop.f32.mrf.mxu0  ;;  %v2632_v47 = vpop.f32.mrf.mxu3 }
 0x30f   : > { %v2550_v3 = vpop.f32.mrf.mxu1 }
 0x310   : > { %v2551_v19 = vadd.f32 %v2550_v3, %v2503_v1 }
 0x312   : > { %v2591_v16 = vadd.f32 %v2590_v40, %v2551_v19 }
 0x314   : > { %v2633_v14 = vadd.f32 %v2632_v47, %v2591_v16 }
 0x315   : > { %v2595_v28 = vpop.f32.mrf.mxu2 }
 0x316   : > { %v2665_v46 = vpop.f32.mrf.mxu0  ;;  %v2638_v36 = vpop.f32.mrf.mxu3 }
 0x317   : > { %v2554_v21 = vpop.f32.mrf.mxu1  ;;  %v2666_v52 = vadd.f32 %v2665_v46, %v2621_v25 }
 0x318   : > { %v2555_v55 = vadd.f32 %v2554_v21, %v2511_v42 }
 0x31a   : > { %v2596_v43 = vadd.f32 %v2595_v28, %v2555_v55 }
 0x31c   : > { %v2639_v62 = vadd.f32 %v2638_v36, %v2596_v43 }
 0x31d   : > { %v2739_v30 = vpop.f32.mrf.mxu2 }
 0x31e   : > { %v2669_v39 = vpop.f32.mrf.mxu0  ;;  %v2794_v13 = vpop.f32.mrf.mxu3 }
 0x31f   : > { %v2700_v18 = vpop.f32.mrf.mxu1  ;;  %v2670_v15 = vadd.f32 %v2669_v39, %v2627_v8 }
 0x320   : > { %v2701_v0 = vadd.f32 %v2700_v18, %v2666_v52 }
 0x322   : > { %v2740_v31 = vadd.f32 %v2739_v30, %v2701_v0 }
 0x324   : > { %v2795_v34 = vadd.f32 %v2794_v13, %v2740_v31 }
 0x325   : > { %v2747_v45 = vpop.f32.mrf.mxu2 }
 0x326   : > { %v2673_v2 = vpop.f32.mrf.mxu0  ;;  %v2798_v54 = vpop.f32.mrf.mxu3 }
 0x327   : > { %v2704_v9 = vpop.f32.mrf.mxu1  ;;  %v2674_v61 = vadd.f32 %v2673_v2, %v2633_v14 }
 0x328   : > { %v2705_v4 = vadd.f32 %v2704_v9, %v2670_v15 }
 0x32a   : > { %v2748_v58 = vadd.f32 %v2747_v45, %v2705_v4 }
 0x32c   : > { %v2799_v12 = vadd.f32 %v2798_v54, %v2748_v58 }
 0x32d   : > { %v2755_v32 = vpop.f32.mrf.mxu2 }
 0x32e   : > { %v2677_v20 = vpop.f32.mrf.mxu0  ;;  %v2802_v48 = vpop.f32.mrf.mxu3 }
 0x32f   : > { %v2708_v49 = vpop.f32.mrf.mxu1  ;;  %v2678_v29 = vadd.f32 %v2677_v20, %v2639_v62 }
 0x330   : > { %v2709_v35 = vadd.f32 %v2708_v49, %v2674_v61 }
 0x332   : > { %v2756_v1 = vadd.f32 %v2755_v32, %v2709_v35 }
 0x334   : > { %v2803_v40 = vadd.f32 %v2802_v48, %v2756_v1 }
 0x335   : > { %v2763_v5 = vpop.f32.mrf.mxu2 }
 0x336   : > { %v2832_v59 = vpop.f32.mrf.mxu0  ;;  %v2806_v6 = vpop.f32.mrf.mxu3 }
 0x337   : > { %v2712_v7 = vpop.f32.mrf.mxu1  ;;  %v2833_v11 = vadd.f32 %v2832_v59, %v2795_v34 }
 0x338   : > { %v2713_v3 = vadd.f32 %v2712_v7, %v2678_v29 }
 0x33a   : > { %v2764_v18 = vadd.f32 %v2763_v5, %v2713_v3 }
 0x33c   : > { %v2807_v45 = vadd.f32 %v2806_v6, %v2764_v18 }
 0x33d   : > { %v2917_v56 = vpop.f32.mrf.mxu2 }
 0x33e   : > { %v2837_v51 = vpop.f32.mrf.mxu0  ;;  %v2952_v23 = vpop.f32.mrf.mxu3 }
 0x33f   : > { %v2872_v33 = vpop.f32.mrf.mxu1  ;;  %v2838_v57 = vadd.f32 %v2837_v51, %v2799_v12 }
 0x340   : > { %v2873_v22 = vadd.f32 %v2872_v33, %v2833_v11 }
 0x342   : > { %v2918_v38 = vadd.f32 %v2917_v56, %v2873_v22 }
 0x344   : > { %v2953_v53 = vadd.f32 %v2952_v23, %v2918_v38 }
 0x345   : > { %v2921_v41 = vpop.f32.mrf.mxu2 }
 0x346   : > { %v2969_v24 = vadd.f32 %v2968_v37, %v2953_v53  ;;  %v2956_v17 = vpop.f32.mrf.mxu3  ;;  %v2842_v27 = vpop.f32.mrf.mxu0 }
 0x347   : > { %v2878_v44 = vpop.f32.mrf.mxu1  ;;  %v2843_v46 = vadd.f32 %v2842_v27, %v2803_v40 }
 0x348   : > { %3212 = vst.msk [vmem:[%s4237_s8 + $0x20] sm:$0xff] %vm1633_vm13, %v2969_v24  ;;  %v2879_v63 = vadd.f32 %v2878_v44, %v2838_v57 }
 0x34a   : > { %v2922_v42 = vadd.f32 %v2921_v41, %v2879_v63 }
 0x34c   : > { %v2957_v47 = vadd.f32 %v2956_v17, %v2922_v42 }
 0x34d   : > { %v2925_v21 = vpop.f32.mrf.mxu2 }
 0x34e   : > { %v2970_v28 = vadd.f32 %v2968_v37, %v2957_v47  ;;  %v2960_v30 = vpop.f32.mrf.mxu3  ;;  %v2847_v2 = vpop.f32.mrf.mxu0 }
 0x34f   : > { %v2884_v39 = vpop.f32.mrf.mxu1  ;;  %v2848_v54 = vadd.f32 %v2847_v2, %v2807_v45 }
 0x350   : > { %3213 = vst.msk [vmem:[%s4237_s8 + $0x28] sm:$0xff] %vm1633_vm13, %v2970_v28  ;;  %v2885_v36 = vadd.f32 %v2884_v39, %v2843_v46 }
 0x352   : > { %v2926_v13 = vadd.f32 %v2925_v21, %v2885_v36 }
 0x354   : > { %v2961_v9 = vadd.f32 %v2960_v30, %v2926_v13 }
 0x355   : > { %v2929_v20 = vpop.f32.mrf.mxu2 }
 0x356   : > { %v2971_v50 = vadd.f32 %v2968_v37, %v2961_v9  ;;  %v2964_v49 = vpop.f32.mrf.mxu3 }
 0x357   : > { %v2890_v60 = vpop.f32.mrf.mxu1 }
 0x358   : > { %3214 = vst.msk [vmem:[%s4237_s8 + $0x30] sm:$0xff] %vm1633_vm13, %v2971_v50  ;;  %v2891_v32 = vadd.f32 %v2890_v60, %v2848_v54 }
 0x35a   : > { %v2930_v48 = vadd.f32 %v2929_v20, %v2891_v32 }
 0x35c   : > { %v2965_v25 = vadd.f32 %v2964_v49, %v2930_v48 }
 0x35e   : > { %v2972_v26 = vadd.f32 %v2968_v37, %v2965_v25 }
 0x360   : > { %3215 = vst.msk [vmem:[%s4237_s8 + $0x38] sm:$0x7f] %vm1637_vm14, %v2972_v26 }
 0x361 PF: > { %p15_p8 = scmp.ge.s32.totalorder %s3440_s17, 4   ;;  %s4432_s12 = smov %s3382_s13 }
 0x362   : > { %s4433_s13 = smov %s3386_s14  ;;  %s4434_s14 = smov %s3450_s20 }
 0x363   : > { %s4435_s15 = smov %s3440_s17  ;;  %17 = sbr.rel (!%p15_p8) target bundleno = 5 (0x5), region = 84 }
 0x368   :  { %2999 = vsyncpa [#allocation3], 1 }
 0x369   :  { %3001 = vsyncpa [#allocation3 + $0x1], 1 }
 0x36a   :  { %3002 = vsyncpa [#allocation4], 1 }
 0x36b   :  { %3004 = vsyncpa [#allocation4 + $0x1], 1 }
 0x36c   :  { %3005 = vsyncpa [#allocation5], 1 }
 0x36d   :  { %3007 = vsyncpa [#allocation5 + $0x1], 1 }

</bundles_post_ra>
